<compile_context>
chip_gen: v5e
topology: v5e:2x2
jax: 0.10.0
libtpu: 0.0.40
codegen_flags: <defaults>
</compile_context>

<pallas_src>
import functools

import jax
import jax.numpy as jnp
from jax.experimental import pallas as pl
from jax.experimental.pallas import tpu as pltpu

# ---------------- config (small, aligned shapes) ----------------
BS, C, H, W = 2, 4, 16, 16
X_DIM = C * H * W            # 1024
TDIM = 128                   # time-feature width
EMB = 128                    # class-embedding width
D_SHARED = X_DIM + TDIM      # 1152 (columns shared by guided / unguided branches)
D_IN = D_SHARED + EMB        # 1280
HID = 256
D_OUT = X_DIM                # 1024
NUM_CLASSES = 11             # class 10 is the "null" / unconditional label
GUIDANCE_SCALE = 3.0
BS_PAD = 16                  # pad batch to bf16 sublane-packing multiple


# ---------------- Pallas kernel: shared-W1 MLP + folded CFG ----------------
def cfg_mlp_kernel(feat_s_ref, emb2_ref, w1s_ref, w1e_ref, b1_ref,
                   w2_ref, b2_ref, out_ref, *, guidance_scale):
    bsp = feat_s_ref.shape[0]

    # Layer-1 shared pre-activation, computed ONCE for both branches
    # (bf16 operands -> native MXU path, f32 accumulate).
    pre = jnp.dot(feat_s_ref[...], w1s_ref[...],
                  preferred_element_type=jnp.float32) + b1_ref[...]

    # Embedding projections: guided rows stacked over unguided rows -> one matmul.
    eproj = jnp.dot(emb2_ref[...], w1e_ref[...],
                    preferred_element_type=jnp.float32)

    hg = jnp.tanh(pre + eproj[:bsp])      # guided hidden   (f32 tanh via EUP)
    hu = jnp.tanh(pre + eproj[bsp:])      # unguided hidden (f32 tanh via EUP)

    # CFG fold before the (linear) W2 layer: a single W2 matmul.
    # (1-s)*(hu@W2+b2) + s*(hg@W2+b2) == ((1-s)*hu + s*hg)@W2 + b2
    h_cfg = (1.0 - guidance_scale) * hu + guidance_scale * hg
    out_ref[...] = jnp.dot(h_cfg.astype(w2_ref.dtype), w2_ref[...],
                           preferred_element_type=jnp.float32) + b2_ref[...]


def _full_spec(shape):
    nd = len(shape)
    return pl.BlockSpec(shape, lambda i, nd=nd: (0,) * nd)


def cfg_mlp_pallas(feat_s, emb2, w1s, w1e, b1, w2, b2, guidance_scale):
    bsp = feat_s.shape[0]
    kernel = functools.partial(cfg_mlp_kernel, guidance_scale=float(guidance_scale))
    return pl.pallas_call(
        kernel,
        out_shape=jax.ShapeDtypeStruct((bsp, D_OUT), jnp.float32),
        grid=(1,),
        in_specs=[_full_spec(a.shape) for a in (feat_s, emb2, w1s, w1e, b1, w2, b2)],
        out_specs=_full_spec((bsp, D_OUT)),
        compiler_params=pltpu.CompilerParams(
            dimension_semantics=("arbitrary",)),
    )(feat_s, emb2, w1s, w1e, b1, w2, b2)


# ---------------- parameters (deterministic init) ----------------
def init_params(key):
    k1, k2, k3, k4, k5 = jax.random.split(key, 5)
    scale1 = 1.0 / jnp.sqrt(D_IN)
    scale2 = 1.0 / jnp.sqrt(HID)
    return {
        "emb": jax.random.normal(k1, (NUM_CLASSES, EMB), jnp.float32) * 0.02,
        "w_time": jax.random.normal(k2, (1, TDIM), jnp.float32),
        # MXU-facing weights stored bf16: halves HBM traffic, native MXU path.
        "w1_shared": (jax.random.normal(k3, (D_SHARED, HID), jnp.float32)
                      * scale1).astype(jnp.bfloat16),
        "w1_emb": (jax.random.normal(k4, (EMB, HID), jnp.float32)
                   * scale1).astype(jnp.bfloat16),
        "b1": jnp.zeros((1, HID), jnp.float32),
        "w2": (jax.random.normal(k5, (HID, D_OUT), jnp.float32)
               * scale2).astype(jnp.bfloat16),
        "b2": jnp.zeros((1, D_OUT), jnp.float32),
    }


# ---------------- CFGVectorFieldODE.forward ----------------
@functools.partial(jax.jit, static_argnames=("guidance_scale",))
def cfg_vector_field_ode(x, t, y, params, guidance_scale=GUIDANCE_SCALE):
    """
    Args:
      x: (bs, c, h, w) float32   (NCHW, same as PyTorch)
      t: (bs, 1, 1, 1) float32
      y: (bs,) int32 class labels
    Returns:
      (bs, c, h, w) float32 guided drift
    """
    bs, c, h, w = x.shape
    x_flat = x.reshape(bs, c * h * w)
    t_feat = t.reshape(bs, 1) * params["w_time"]                 # (bs, TDIM)
    feat_s = jnp.concatenate([x_flat, t_feat], axis=-1)          # (bs, D_SHARED)

    y_null = jnp.full_like(y, 10)                                # torch.ones_like(y) * 10
    emb_g = jnp.take(params["emb"], y, axis=0)                   # (bs, EMB)
    emb_u = jnp.take(params["emb"], y_null, axis=0)              # (bs, EMB)

    pad = BS_PAD - bs
    feat_s = jnp.pad(feat_s, ((0, pad), (0, 0))).astype(jnp.bfloat16)
    emb2 = jnp.concatenate([jnp.pad(emb_g, ((0, pad), (0, 0))),
                            jnp.pad(emb_u, ((0, pad), (0, 0)))],
                           axis=0).astype(jnp.bfloat16)          # (2*BS_PAD, EMB)

    # TODO(synk): when driven by an ODE solver, keep W1/W2 resident in VMEM across
    # steps (grid over solver steps with constant weight index_map, or cross-call
    # prefetch) instead of re-DMAing ~1.2 MB of bf16 weights per call.
    out = cfg_mlp_pallas(feat_s, emb2, params["w1_shared"], params["w1_emb"],
                         params["b1"], params["w2"], params["b2"], guidance_scale)
    return out[:bs].reshape(bs, c, h, w)


# ---------------- pure-JAX reference (two-branch, matching precision) ----------------
def _net_ref(x, t, y, params):
    bs = x.shape[0]
    x_flat = x.reshape(bs, -1)
    t_feat = t.reshape(bs, 1) * params["w_time"]
    feat = jnp.concatenate(
        [x_flat, t_feat, jnp.take(params["emb"], y, axis=0)], -1)
    feat = feat.astype(jnp.bfloat16).astype(jnp.float32)   # match kernel-input rounding
    w1 = jnp.concatenate([params["w1_shared"], params["w1_emb"]],
                         axis=0).astype(jnp.float32)
    hdn = jnp.tanh(feat @ w1 + params["b1"])
    out = hdn @ params["w2"].astype(jnp.float32) + params["b2"]
    return out.reshape(bs, C, H, W)


def _cfg_ref(x, t, y, params, s=GUIDANCE_SCALE):
    guided = _net_ref(x, t, y, params)
    unguided = _net_ref(x, t, jnp.full_like(y, 10), params)
    return (1.0 - s) * unguided + s * guided


if __name__ == "__main__":
    key = jax.random.PRNGKey(0)
    kp, kx, kt, ky = jax.random.split(key, 4)
    params = init_params(kp)

    x = jax.random.normal(kx, (BS, C, H, W), jnp.float32)
    t = jax.random.uniform(kt, (BS, 1, 1, 1), jnp.float32)
    y = jax.random.randint(ky, (BS,), 0, 10, jnp.int32)

    out = cfg_vector_field_ode(x, t, y, params)
    out = jax.block_until_ready(out)

    ref = _cfg_ref(x, t, y, params)
    assert out.shape == (BS, C, H, W)
    # bf16 weights/activations on the MXU path -> looser tolerance than pure f32.
    assert jnp.allclose(out, ref, atol=5e-2, rtol=5e-2), "mismatch vs reference"

    print("KERNEL_OK")
</pallas_src>

<mosaic_0001>
module attributes {stable_mosaic.version = 11 : i64} {
  func.func @cfg_mlp_kernel(%arg0: i32, %arg1: memref<16x1152xbf16, #tpu.memory_space<vmem>>, %arg2: memref<32x128xbf16, #tpu.memory_space<vmem>>, %arg3: memref<1152x256xbf16, #tpu.memory_space<vmem>>, %arg4: memref<128x256xbf16, #tpu.memory_space<vmem>>, %arg5: memref<1x256xf32, #tpu.memory_space<vmem>>, %arg6: memref<256x1024xbf16, #tpu.memory_space<vmem>>, %arg7: memref<1x1024xf32, #tpu.memory_space<vmem>>, %arg8: memref<16x1024xf32, #tpu.memory_space<vmem>>) attributes {dimension_semantics = [#tpu.dimension_semantics<arbitrary>], iteration_bounds = array<i64: 1>, scalar_prefetch = 0 : i64, scratch_operands = 0 : i64, tpu.core_type = #tpu.core_type<tc>, window_params = [{pipeline_mode = #tpu.pipeline_mode<synchronous>, transform_indices = @transform_0, window_bounds = array<i64: 16, 1152>}, {pipeline_mode = #tpu.pipeline_mode<synchronous>, transform_indices = @transform_1, window_bounds = array<i64: 32, 128>}, {pipeline_mode = #tpu.pipeline_mode<synchronous>, transform_indices = @transform_2, window_bounds = array<i64: 1152, 256>}, {pipeline_mode = #tpu.pipeline_mode<synchronous>, transform_indices = @transform_3, window_bounds = array<i64: 128, 256>}, {pipeline_mode = #tpu.pipeline_mode<synchronous>, transform_indices = @transform_4, window_bounds = array<i64: 1, 256>}, {pipeline_mode = #tpu.pipeline_mode<synchronous>, transform_indices = @transform_5, window_bounds = array<i64: 256, 1024>}, {pipeline_mode = #tpu.pipeline_mode<synchronous>, transform_indices = @transform_6, window_bounds = array<i64: 1, 1024>}, {pipeline_mode = #tpu.pipeline_mode<synchronous>, transform_indices = @transform_7, window_bounds = array<i64: 16, 1024>}]} {
    %c0 = arith.constant 0 : index
    %c0_0 = arith.constant 0 : index
    %0 = vector.load %arg1[%c0, %c0_0] : memref<16x1152xbf16, #tpu.memory_space<vmem>>, vector<16x1152xbf16>
    %c0_1 = arith.constant 0 : index
    %c0_2 = arith.constant 0 : index
    %1 = vector.load %arg3[%c0_1, %c0_2] : memref<1152x256xbf16, #tpu.memory_space<vmem>>, vector<1152x256xbf16>
    %cst = arith.constant dense<0.000000e+00> : vector<16x256xf32>
    %2 = tpu.matmul %0, %1, %cst {dimension_numbers = #tpu.dot_dimension_numbers<[1], [0], [0], [1], [0, 0, 1, 1], [], []>} : vector<16x1152xbf16>, vector<1152x256xbf16>, vector<16x256xf32> -> vector<16x256xf32>
    %c0_3 = arith.constant 0 : index
    %c0_4 = arith.constant 0 : index
    %3 = vector.load %arg5[%c0_3, %c0_4] : memref<1x256xf32, #tpu.memory_space<vmem>>, vector<1x256xf32>
    %4 = vector.broadcast %3 : vector<1x256xf32> to vector<16x256xf32>
    %5 = arith.addf %2, %4 : vector<16x256xf32>
    %c0_5 = arith.constant 0 : index
    %c0_6 = arith.constant 0 : index
    %6 = vector.load %arg2[%c0_5, %c0_6] : memref<32x128xbf16, #tpu.memory_space<vmem>>, vector<32x128xbf16>
    %c0_7 = arith.constant 0 : index
    %c0_8 = arith.constant 0 : index
    %7 = vector.load %arg4[%c0_7, %c0_8] : memref<128x256xbf16, #tpu.memory_space<vmem>>, vector<128x256xbf16>
    %cst_9 = arith.constant dense<0.000000e+00> : vector<32x256xf32>
    %8 = tpu.matmul %6, %7, %cst_9 {dimension_numbers = #tpu.dot_dimension_numbers<[1], [0], [0], [1], [0, 0, 1, 1], [], []>} : vector<32x128xbf16>, vector<128x256xbf16>, vector<32x256xf32> -> vector<32x256xf32>
    %9 = vector.extract_strided_slice %8 {offsets = [0, 0], sizes = [16, 256], strides = [1, 1]} : vector<32x256xf32> to vector<16x256xf32>
    %10 = arith.addf %5, %9 : vector<16x256xf32>
    %11 = math.tanh %10 : vector<16x256xf32>
    %12 = vector.extract_strided_slice %8 {offsets = [16, 0], sizes = [16, 256], strides = [1, 1]} : vector<32x256xf32> to vector<16x256xf32>
    %13 = arith.addf %5, %12 : vector<16x256xf32>
    %14 = math.tanh %13 : vector<16x256xf32>
    %cst_10 = arith.constant -2.000000e+00 : f32
    %15 = vector.broadcast %cst_10 : f32 to vector<16x256xf32>
    %16 = arith.mulf %15, %14 : vector<16x256xf32>
    %cst_11 = arith.constant 3.000000e+00 : f32
    %17 = vector.broadcast %cst_11 : f32 to vector<16x256xf32>
    %18 = arith.mulf %17, %11 : vector<16x256xf32>
    %19 = arith.addf %16, %18 : vector<16x256xf32>
    %20 = arith.truncf %19 : vector<16x256xf32> to vector<16x256xbf16>
    %c0_12 = arith.constant 0 : index
    %c0_13 = arith.constant 0 : index
    %21 = vector.load %arg6[%c0_12, %c0_13] : memref<256x1024xbf16, #tpu.memory_space<vmem>>, vector<256x1024xbf16>
    %cst_14 = arith.constant dense<0.000000e+00> : vector<16x1024xf32>
    %22 = tpu.matmul %20, %21, %cst_14 {dimension_numbers = #tpu.dot_dimension_numbers<[1], [0], [0], [1], [0, 0, 1, 1], [], []>} : vector<16x256xbf16>, vector<256x1024xbf16>, vector<16x1024xf32> -> vector<16x1024xf32>
    %c0_15 = arith.constant 0 : index
    %c0_16 = arith.constant 0 : index
    %23 = vector.load %arg7[%c0_15, %c0_16] : memref<1x1024xf32, #tpu.memory_space<vmem>>, vector<1x1024xf32>
    %24 = vector.broadcast %23 : vector<1x1024xf32> to vector<16x1024xf32>
    %25 = arith.addf %22, %24 : vector<16x1024xf32>
    %c0_17 = arith.constant 0 : index
    %c0_18 = arith.constant 0 : index
    %26 = vector.load %arg8[%c0_17, %c0_18] : memref<16x1024xf32, #tpu.memory_space<vmem>>, vector<16x1024xf32>
    tpu.vector_store %arg8[%c0_17, %c0_18], %25 {strides = array<i32>} : memref<16x1024xf32, #tpu.memory_space<vmem>>, vector<16x1024xf32>,
    return
  }
  func.func @transform_0(%arg0: i32) -> (i32, i32) {
    %c0_i32 = arith.constant 0 : i32
    %c0_i32_0 = arith.constant 0 : i32
    %c0_i32_1 = arith.constant 0 : i32
    return %c0_i32, %c0_i32_0 : i32, i32
  }
  func.func @transform_1(%arg0: i32) -> (i32, i32) {
    %c0_i32 = arith.constant 0 : i32
    %c0_i32_0 = arith.constant 0 : i32
    %c0_i32_1 = arith.constant 0 : i32
    return %c0_i32, %c0_i32_0 : i32, i32
  }
  func.func @transform_2(%arg0: i32) -> (i32, i32) {
    %c0_i32 = arith.constant 0 : i32
    %c0_i32_0 = arith.constant 0 : i32
    %c0_i32_1 = arith.constant 0 : i32
    return %c0_i32, %c0_i32_0 : i32, i32
  }
  func.func @transform_3(%arg0: i32) -> (i32, i32) {
    %c0_i32 = arith.constant 0 : i32
    %c0_i32_0 = arith.constant 0 : i32
    %c0_i32_1 = arith.constant 0 : i32
    return %c0_i32, %c0_i32_0 : i32, i32
  }
  func.func @transform_4(%arg0: i32) -> (i32, i32) {
    %c0_i32 = arith.constant 0 : i32
    %c0_i32_0 = arith.constant 0 : i32
    %c0_i32_1 = arith.constant 0 : i32
    return %c0_i32, %c0_i32_0 : i32, i32
  }
  func.func @transform_5(%arg0: i32) -> (i32, i32) {
    %c0_i32 = arith.constant 0 : i32
    %c0_i32_0 = arith.constant 0 : i32
    %c0_i32_1 = arith.constant 0 : i32
    return %c0_i32, %c0_i32_0 : i32, i32
  }
  func.func @transform_6(%arg0: i32) -> (i32, i32) {
    %c0_i32 = arith.constant 0 : i32
    %c0_i32_0 = arith.constant 0 : i32
    %c0_i32_1 = arith.constant 0 : i32
    return %c0_i32, %c0_i32_0 : i32, i32
  }
  func.func @transform_7(%arg0: i32) -> (i32, i32) {
    %c0_i32 = arith.constant 0 : i32
    %c0_i32_0 = arith.constant 0 : i32
    %c0_i32_1 = arith.constant 0 : i32
    return %c0_i32, %c0_i32_0 : i32, i32
  }
}

</mosaic_0001>

<bundles_post_ra>
// kernel: cfg_vector_field_ode.1
= control target key start
LH: loop header
LB: loop body
LE: loop exit
PB: predicated region body
PF: predicated region fallthrough
CT: control target
= control target key end

     0   :  { %12 = vsyncpa [#allocation3], 0  ;;  %s4413_s0 = inlined_call_operand.vmem [shape: bf16[16,1152], index: 0, kind: input, shape index: {}]   ;;  %s4414_s1 = inlined_call_operand.vmem [shape: bf16[32,128], index: 1, kind: input, shape index: {}]   ;;  %s4415_s2 = inlined_call_operand.hbm [shape: bf16[1152,256], index: 2, kind: input, shape index: {}]   ;;  %s4416_s3 = inlined_call_operand.vmem [shape: bf16[128,256], index: 3, kind: input, shape index: {}]   ;;  %s4417_s4 = inlined_call_operand.vmem [shape: f32[1,256], index: 4, kind: input, shape index: {}]   ;;  %s4418_s5 = inlined_call_operand.hbm [shape: bf16[256,1024], index: 5, kind: input, shape index: {}]   ;;  %s4419_s6 = inlined_call_operand.vmem [shape: f32[1,1024], index: 6, kind: input, shape index: {}]   ;;  %s4420_s7 = inlined_call_operand.vmem [shape: f32[16,1024], index: 7, kind: output, shape index: {}]  }
   0x1   :  { %s22_s26 = sshll.u32 %s4415_s2, 4  ;;  %s23_s26 = int_to_ptr.hbm [resolvable:$true] %s22_s26 }
   0x2   :  { %13 = vsyncpa [#allocation5], 0  ;;  %s4017_s27 = smov [#allocation2]   ;;  %s39_s8 = sshll.u32 %s4418_s5, 4  ;;  %s40_s8 = int_to_ptr.hbm [resolvable:$true] %s39_s8 }
   0x3   :  { %s24_s28 = sshll.u32 %s4017_s27, 4  ;;  %s4018_s9 = smov 128   ;;  %s25_s28 = int_to_ptr.vmem [resolvable:$true] %s24_s28 }
   0x4   :  { %s4019_s10 = smov 8   ;;  %s4020_s11 = smov [#allocation4]  }
   0x5   :  { %30 = dma.hbm_to_vmem [thread:$0]  %s23_s26, 18432, %s25_s28, [#allocation3], %s4018_s9, %s4018_s9, %s4019_s10  }
   0x6   :  { %s41_s12 = sshll.u32 %s4020_s11, 4  ;;  %s4021_s13 = smov 512   ;;  %s42_s12 = int_to_ptr.vmem [resolvable:$true] %s41_s12 }
   0x7   :  { %s4022_s14 = smov 32  }
   0x8   :  { %47 = dma.hbm_to_vmem [thread:$0]  %s40_s8, 16384, %s42_s12, [#allocation5], %s4021_s13, %s4021_s13, %s4022_s14  }
   0x9   :  { %4013 = dma.done.wait [#allocation3], 18432  }
   0xa   :  { %4014 = vsyncadd [#allocation3], 4294948864 }
   0xb   :  { %4015 = dma.done.wait [#allocation5], 16384  }
   0xc   :  { %4016 = vsyncadd [#allocation5], 4294950912  ;;  %v2542_v0 = vld [vmem:[#allocation2 + $0x70] sm:$0xf]  ;;  %v3668_v1 = vld [vmem:[#allocation2 + $0x74] sm:$0xf0] }
   0xd   :  { %v2670_v2 = vld [vmem:[#allocation2 + $0x170] sm:$0xf]  ;;  %v2543_v3 = vor.u32 %v3668_v1, %v2542_v0  ;;  %v3700_v4 = vld [vmem:[#allocation2 + $0x174] sm:$0xf0]  ;;  %v2534_v11 = vld [vmem:[#allocation2 + $0x60] sm:$0xf] }
   0xe   :  { %v2734_v5 = vld [vmem:[#allocation2 + $0x1f0] sm:$0xf]  ;;  %v3716_v6 = vld [vmem:[#allocation2 + $0x1f4] sm:$0xf0]  ;;  %v2671_v7 = vor.u32 %v3700_v4, %v2670_v2  ;;  %v3666_v13 = vld [vmem:[#allocation2 + $0x64] sm:$0xf0] }
   0xf   :  { %v2735_v8 = vor.u32 %v3716_v6, %v2734_v5  ;;  %v2606_v9 = vld [vmem:[#allocation2 + $0xf0] sm:$0xf]  ;;  %v3684_v10 = vld [vmem:[#allocation2 + $0xf4] sm:$0xf0]  ;;  %984 = vmatpush.bf16.msra.mxu0 %v2543_v3  ;;  %v2662_v14 = vld [vmem:[#allocation2 + $0x160] sm:$0xf]  ;;  %v2535_v16 = vor.u32 %v3666_v13, %v2534_v11 }
  0x10   :  { %v2607_v12 = vor.u32 %v3684_v10, %v2606_v9  ;;  %v3698_v15 = vld [vmem:[#allocation2 + $0x164] sm:$0xf0]  ;;  %1012 = vmatpush.bf16.msra.mxu2 %v2671_v7  ;;  %v2726_v18 = vld [vmem:[#allocation2 + $0x1e0] sm:$0xf]  ;;  %v2526_v23 = vld [vmem:[#allocation2 + $0x50] sm:$0xf] }
  0x11   :  { %1026 = vmatpush.bf16.msra.mxu3 %v2735_v8  ;;  %v2663_v17 = vor.u32 %v3698_v15, %v2662_v14  ;;  %v3714_v19 = vld [vmem:[#allocation2 + $0x1e4] sm:$0xf0]  ;;  %v2598_v20 = vld [vmem:[#allocation2 + $0xe0] sm:$0xf]  ;;  %v3664_v24 = vld [vmem:[#allocation2 + $0x54] sm:$0xf0] }
  0x12   :  { %998 = vmatpush.bf16.msra.mxu1 %v2607_v12  ;;  %v2727_v21 = vor.u32 %v3714_v19, %v2726_v18  ;;  %v3682_v22 = vld [vmem:[#allocation2 + $0xe4] sm:$0xf0]  ;;  %v2654_v26 = vld [vmem:[#allocation2 + $0x150] sm:$0xf]  ;;  %v3696_v27 = vld [vmem:[#allocation2 + $0x154] sm:$0xf0]  ;;  %v2527_v29 = vor.u32 %v3664_v24, %v2526_v23 }
  0x13   :  { %v2599_v25 = vor.u32 %v3682_v22, %v2598_v20  ;;  %v2718_v28 = vld [vmem:[#allocation2 + $0x1d0] sm:$0xf]  ;;  %985 = vmatpush.bf16.msra.mxu0 %v2535_v16  ;;  %v3712_v30 = vld [vmem:[#allocation2 + $0x1d4] sm:$0xf0]  ;;  %v2655_v33 = vor.u32 %v3696_v27, %v2654_v26  ;;  %v2518_v35 = vld [vmem:[#allocation2 + $0x40] sm:$0xf] }
  0x14   :  { %v2590_v31 = vld [vmem:[#allocation2 + $0xd0] sm:$0xf]  ;;  %v3680_v32 = vld [vmem:[#allocation2 + $0xd4] sm:$0xf0]  ;;  %1013 = vmatpush.bf16.msra.mxu2 %v2663_v17  ;;  %v2719_v34 = vor.u32 %v3712_v30, %v2718_v28  ;;  %v3662_v36 = vld [vmem:[#allocation2 + $0x44] sm:$0xf0] }
  0x15   :  { %1027 = vmatpush.bf16.msra.mxu3 %v2727_v21  ;;  %v2646_v37 = vld [vmem:[#allocation2 + $0x140] sm:$0xf]  ;;  %v2591_v38 = vor.u32 %v3680_v32, %v2590_v31  ;;  %v3694_v39 = vld [vmem:[#allocation2 + $0x144] sm:$0xf0]  ;;  %v2519_v44 = vor.u32 %v3662_v36, %v2518_v35  ;;  %v2510_v47 = vld [vmem:[#allocation2 + $0x30] sm:$0xf] }
  0x16   :  { %999 = vmatpush.bf16.msra.mxu1 %v2599_v25  ;;  %v2710_v40 = vld [vmem:[#allocation2 + $0x1c0] sm:$0xf]  ;;  %v3710_v41 = vld [vmem:[#allocation2 + $0x1c4] sm:$0xf0]  ;;  %v2647_v45 = vor.u32 %v3694_v39, %v2646_v37  ;;  %v3660_v48 = vld [vmem:[#allocation2 + $0x34] sm:$0xf0] }
  0x17   :  { %v2582_v42 = vld [vmem:[#allocation2 + $0xc0] sm:$0xf]  ;;  %v3678_v43 = vld [vmem:[#allocation2 + $0xc4] sm:$0xf0]  ;;  %986 = vmatpush.bf16.msra.mxu0 %v2527_v29  ;;  %v2711_v46 = vor.u32 %v3710_v41, %v2710_v40  ;;  %v2638_v49 = vld [vmem:[#allocation2 + $0x130] sm:$0xf]  ;;  %v2511_v56 = vor.u32 %v3660_v48, %v2510_v47 }
  0x18   :  { %1014 = vmatpush.bf16.msra.mxu2 %v2655_v33  ;;  %v2583_v50 = vor.u32 %v3678_v43, %v2582_v42  ;;  %v3692_v51 = vld [vmem:[#allocation2 + $0x134] sm:$0xf0]  ;;  %v2702_v52 = vld [vmem:[#allocation2 + $0x1b0] sm:$0xf]  ;;  %v2502_v59 = vld [vmem:[#allocation2 + $0x20] sm:$0xf] }
  0x19   :  { %1028 = vmatpush.bf16.msra.mxu3 %v2719_v34  ;;  %v3708_v53 = vld [vmem:[#allocation2 + $0x1b4] sm:$0xf0]  ;;  %v2574_v54 = vld [vmem:[#allocation2 + $0xb0] sm:$0xf]  ;;  %v2639_v57 = vor.u32 %v3692_v51, %v2638_v49  ;;  %v3658_v60 = vld [vmem:[#allocation2 + $0x24] sm:$0xf0] }
  0x1a   :  { %1000 = vmatpush.bf16.msra.mxu1 %v2591_v38  ;;  %v3676_v55 = vld [vmem:[#allocation2 + $0xb4] sm:$0xf0]  ;;  %v2703_v58 = vor.u32 %v3708_v53, %v2702_v52  ;;  %v2630_v61 = vld [vmem:[#allocation2 + $0x120] sm:$0xf]  ;;  %v3690_v63 = vld [vmem:[#allocation2 + $0x124] sm:$0xf0]  ;;  %v2503_v4 = vor.u32 %v3658_v60, %v2502_v59 }
  0x1b   :  { %987 = vmatpush.bf16.msra.mxu0 %v2519_v44  ;;  %v2575_v62 = vor.u32 %v3676_v55, %v2574_v54  ;;  %v2694_v0 = vld [vmem:[#allocation2 + $0x1a0] sm:$0xf]  ;;  %v3706_v1 = vld [vmem:[#allocation2 + $0x1a4] sm:$0xf0]  ;;  %v2631_v5 = vor.u32 %v3690_v63, %v2630_v61  ;;  %v2494_v7 = vld [vmem:[#allocation2 + $0x10] sm:$0xf] }
  0x1c   :  { %1015 = vmatpush.bf16.msra.mxu2 %v2647_v45  ;;  %v2566_v2 = vld [vmem:[#allocation2 + $0xa0] sm:$0xf]  ;;  %v3674_v3 = vld [vmem:[#allocation2 + $0xa4] sm:$0xf0]  ;;  %v2695_v6 = vor.u32 %v3706_v1, %v2694_v0  ;;  %v3656_v8 = vld [vmem:[#allocation2 + $0x14] sm:$0xf0] }
  0x1d   :  { %1029 = vmatpush.bf16.msra.mxu3 %v2711_v46  ;;  %v2622_v9 = vld [vmem:[#allocation2 + $0x110] sm:$0xf]  ;;  %v2567_v10 = vor.u32 %v3674_v3, %v2566_v2  ;;  %v3688_v11 = vld [vmem:[#allocation2 + $0x114] sm:$0xf0]  ;;  %v2495_v16 = vor.u32 %v3656_v8, %v2494_v7  ;;  %v2486_v17 = vld [vmem:[#allocation2] sm:$0xf] }
  0x1e   :  { %1001 = vmatpush.bf16.msra.mxu1 %v2583_v50  ;;  %v2686_v12 = vld [vmem:[#allocation2 + $0x190] sm:$0xf]  ;;  %v3704_v13 = vld [vmem:[#allocation2 + $0x194] sm:$0xf0]  ;;  %v3654_v18 = vld [vmem:[#allocation2 + $0x4] sm:$0xf0]  ;;  %v2623_v19 = vor.u32 %v3688_v11, %v2622_v9 }
  0x1f   :  { %988 = vmatpush.bf16.msra.mxu0 %v2511_v56  ;;  %v2558_v14 = vld [vmem:[#allocation2 + $0x90] sm:$0xf]  ;;  %v3672_v15 = vld [vmem:[#allocation2 + $0x94] sm:$0xf0]  ;;  %v2687_v20 = vor.u32 %v3704_v13, %v2686_v12  ;;  %v2614_v21 = vld [vmem:[#allocation2 + $0x100] sm:$0xf]  ;;  %v2487_v31 = vor.u32 %v3654_v18, %v2486_v17 }
  0x20   :  { %1016 = vmatpush.bf16.msra.mxu2 %v2639_v57  ;;  %v3686_v22 = vld [vmem:[#allocation2 + $0x104] sm:$0xf0]  ;;  %v2678_v23 = vld [vmem:[#allocation2 + $0x180] sm:$0xf]  ;;  %v2559_v24 = vor.u32 %v3672_v15, %v2558_v14  ;;  %v2798_v26 = vld [vmem:[#allocation2 + $0x270] sm:$0xf] }
  0x21   :  { %1030 = vmatpush.bf16.msra.mxu3 %v2703_v58  ;;  %v3702_v25 = vld [vmem:[#allocation2 + $0x184] sm:$0xf0]  ;;  %v3732_v27 = vld [vmem:[#allocation2 + $0x274] sm:$0xf0]  ;;  %v2926_v28 = vld [vmem:[#allocation2 + $0x370] sm:$0xf]  ;;  %v2615_v35 = vor.u32 %v3686_v22, %v2614_v21 }
  0x22   :  { %1002 = vmatpush.bf16.msra.mxu1 %v2575_v62  ;;  %v3764_v29 = vld [vmem:[#allocation2 + $0x374] sm:$0xf0]  ;;  %v2990_v30 = vld [vmem:[#allocation2 + $0x3f0] sm:$0xf]  ;;  %v2550_v33 = vld [vmem:[#allocation2 + $0x80] sm:$0xf]  ;;  %v2679_v36 = vor.u32 %v3702_v25, %v2678_v23  ;;  %v2799_v39 = vor.u32 %v3732_v27, %v2798_v26 }
  0x23   :  { %989 = vmatpush.bf16.msra.mxu0 %v2503_v4  ;;  %v3780_v32 = vld [vmem:[#allocation2 + $0x3f4] sm:$0xf0]  ;;  %v3670_v34 = vld [vmem:[#allocation2 + $0x84] sm:$0xf0]  ;;  %v2862_v37 = vld [vmem:[#allocation2 + $0x2f0] sm:$0xf]  ;;  %v2927_v40 = vor.u32 %v3764_v29, %v2926_v28 }
  0x24   :  { %1017 = vmatpush.bf16.msra.mxu2 %v2631_v5  ;;  %v3748_v38 = vld [vmem:[#allocation2 + $0x2f4] sm:$0xf0]  ;;  %v2790_v41 = vld [vmem:[#allocation2 + $0x260] sm:$0xf]  ;;  %v3730_v42 = vld [vmem:[#allocation2 + $0x264] sm:$0xf0]  ;;  %v2991_v43 = vor.u32 %v3780_v32, %v2990_v30  ;;  %v2551_v44 = vor.u32 %v3670_v34, %v2550_v33 }
  0x25   :  { %1031 = vmatpush.bf16.msra.mxu3 %v2695_v6  ;;  %v2918_v45 = vld [vmem:[#allocation2 + $0x360] sm:$0xf]  ;;  %v3762_v46 = vld [vmem:[#allocation2 + $0x364] sm:$0xf0]  ;;  %v2863_v48 = vor.u32 %v3748_v38, %v2862_v37  ;;  %v2782_v52 = vld [vmem:[#allocation2 + $0x250] sm:$0xf]  ;;  %v2791_v56 = vor.u32 %v3730_v42, %v2790_v41 }
  0x26   :  { %1003 = vmatpush.bf16.msra.mxu1 %v2567_v10  ;;  %v2982_v47 = vld [vmem:[#allocation2 + $0x3e0] sm:$0xf]  ;;  %v3778_v49 = vld [vmem:[#allocation2 + $0x3e4] sm:$0xf0]  ;;  %v3648_v54 = vld [vmem:[%s4413_s0 + $0x20] sm:$0xf0]  ;;  %v2919_v57 = vor.u32 %v3762_v46, %v2918_v45 }
  0x27   :  { %990 = vmatpush.bf16.msra.mxu0 %v2495_v16  ;;  %v2854_v50 = vld [vmem:[#allocation2 + $0x2e0] sm:$0xf]  ;;  %v3746_v51 = vld [vmem:[#allocation2 + $0x2e4] sm:$0xf0]  ;;  %v3728_v58 = vld [vmem:[#allocation2 + $0x254] sm:$0xf0]  ;;  %v2983_v62 = vor.u32 %v3778_v49, %v2982_v47 }
  0x28   :  { %1018 = vmatpush.bf16.msra.mxu2 %v2623_v19  ;;  %v2450_v53 = vld [vmem:[%s4413_s0] sm:$0xf]  ;;  %v2458_v55 = vld [vmem:[%s4413_s0 + $0x8] sm:$0xf]  ;;  %v2910_v59 = vld [vmem:[#allocation2 + $0x350] sm:$0xf]  ;;  %v2855_v3 = vor.u32 %v3746_v51, %v2854_v50  ;;  %v2783_v11 = vor.u32 %v3728_v58, %v2782_v52 }
  0x29   :  { %1032 = vmatpush.bf16.msra.mxu3 %v2687_v20  ;;  %v4078_v60 = vor.u32 %v3648_v54, %v2450_v53  ;;  %v3649_v61 = vld [vmem:[%s4413_s0 + $0x28] sm:$0xf0]  ;;  %v3760_v63 = vld [vmem:[#allocation2 + $0x354] sm:$0xf0]  ;;  %v2974_v0 = vld [vmem:[#allocation2 + $0x3d0] sm:$0xf] }
  0x2a   :  { %1004 = vmatpush.bf16.msra.mxu1 %v2559_v24  ;;  %v3776_v1 = vld [vmem:[#allocation2 + $0x3d4] sm:$0xf0]  ;;  %v4083_v2 = vor.u32 %v3649_v61, %v2458_v55  ;;  %v2846_v4 = vld [vmem:[#allocation2 + $0x2d0] sm:$0xf]  ;;  %v3644_v5 = vld [vmem:[%s4413_s0 + $0x4] sm:$0xf]  ;;  %v2911_v12 = vor.u32 %v3760_v63, %v2910_v59 }
  0x2b   :  { %991 = vmatpush.bf16.msra.mxu0 %v2487_v31  ;;  %v2452_v6 = vld [vmem:[%s4413_s0 + $0x24] sm:$0xf0]  ;;  %v3744_v7 = vld [vmem:[#allocation2 + $0x2d4] sm:$0xf0]  ;;  %v3645_v9 = vld [vmem:[%s4413_s0 + $0xc] sm:$0xf]  ;;  %v2975_v15 = vor.u32 %v3776_v1, %v2974_v0 }
  0x2c   :  { %1019 = vmatpush.bf16.msra.mxu2 %v2615_v35  ;;  %v4093_v8 = vor.u32 %v3644_v5, %v2452_v6  ;;  %v2460_v10 = vld [vmem:[%s4413_s0 + $0x2c] sm:$0xf0]  ;;  %v2774_v13 = vld [vmem:[#allocation2 + $0x240] sm:$0xf]  ;;  %v3726_v16 = vld [vmem:[#allocation2 + $0x244] sm:$0xf0]  ;;  %v2847_v19 = vor.u32 %v3744_v7, %v2846_v4 }
  0x2d   :  { %1033 = vmatpush.bf16.msra.mxu3 %v2679_v36  ;;  %v4101_v14 = vor.u32 %v3645_v9, %v2460_v10  ;;  %v2902_v17 = vld [vmem:[#allocation2 + $0x340] sm:$0xf]  ;;  %v3758_v18 = vld [vmem:[#allocation2 + $0x344] sm:$0xf0]  ;;  %v2775_v24 = vor.u32 %v3726_v16, %v2774_v13  ;;  %v2766_v26 = vld [vmem:[#allocation2 + $0x230] sm:$0xf] }
  0x2e   :  { %1005 = vmatpush.bf16.msra.mxu1 %v2551_v44  ;;  %992 = vmatmul.bf16.vlgmr.msra.gmra.mxu0 %v4078_v60  ;;  %v2966_v20 = vld [vmem:[#allocation2 + $0x3c0] sm:$0xf]  ;;  %v3774_v21 = vld [vmem:[#allocation2 + $0x3c4] sm:$0xf0]  ;;  %v2903_v25 = vor.u32 %v3758_v18, %v2902_v17  ;;  %v3724_v28 = vld [vmem:[#allocation2 + $0x234] sm:$0xf0] }
  0x2f   :  { %1040 = vmatpush.bf16.msrb.mxu0 %v2799_v39  ;;  %1020 = vmatmul.bf16.vlgmr.msra.gmra.mxu2 %v4083_v2  ;;  %v2838_v22 = vld [vmem:[#allocation2 + $0x2c0] sm:$0xf]  ;;  %v3742_v23 = vld [vmem:[#allocation2 + $0x2c4] sm:$0xf0]  ;;  %v2967_v27 = vor.u32 %v3774_v21, %v2966_v20  ;;  %v2894_v29 = vld [vmem:[#allocation2 + $0x330] sm:$0xf]  ;;  %v2767_v36 = vor.u32 %v3724_v28, %v2766_v26 }
  0x30   :  { %1068 = vmatpush.bf16.msrb.mxu2 %v2927_v40  ;;  %1034 = vmatmul.bf16.vlgmr.msra.gmra.mxu3 %v4101_v14  ;;  %v3756_v30 = vld [vmem:[#allocation2 + $0x334] sm:$0xf0]  ;;  %v2839_v31 = vor.u32 %v3742_v23, %v2838_v22  ;;  %v2958_v32 = vld [vmem:[#allocation2 + $0x3b0] sm:$0xf]  ;;  %v2758_v38 = vld [vmem:[#allocation2 + $0x220] sm:$0xf] }
  0x31   :  { %1082 = vmatpush.bf16.msrb.mxu3 %v2991_v43  ;;  %1006 = vmatmul.bf16.vlgmr.msra.gmra.mxu1 %v4093_v8  ;;  %v3772_v33 = vld [vmem:[#allocation2 + $0x3b4] sm:$0xf0]  ;;  %v2830_v34 = vld [vmem:[#allocation2 + $0x2b0] sm:$0xf]  ;;  %v2895_v37 = vor.u32 %v3756_v30, %v2894_v29  ;;  %v3722_v40 = vld [vmem:[#allocation2 + $0x224] sm:$0xf0] }
  0x32   :  { %1054 = vmatpush.bf16.msrb.mxu1 %v2863_v48  ;;  %v3740_v35 = vld [vmem:[#allocation2 + $0x2b4] sm:$0xf0]  ;;  %v2959_v39 = vor.u32 %v3772_v33, %v2958_v32  ;;  %v2886_v41 = vld [vmem:[#allocation2 + $0x320] sm:$0xf]  ;;  %v3754_v42 = vld [vmem:[#allocation2 + $0x324] sm:$0xf0]  ;;  %v2759_v48 = vor.u32 %v3722_v40, %v2758_v38 }
  0x33   :  { %1041 = vmatpush.bf16.msrb.mxu0 %v2791_v56  ;;  %v2831_v43 = vor.u32 %v3740_v35, %v2830_v34  ;;  %v2950_v44 = vld [vmem:[#allocation2 + $0x3a0] sm:$0xf]  ;;  %v3770_v45 = vld [vmem:[#allocation2 + $0x3a4] sm:$0xf0]  ;;  %v2887_v49 = vor.u32 %v3754_v42, %v2886_v41  ;;  %v2750_v50 = vld [vmem:[#allocation2 + $0x210] sm:$0xf] }
  0x34   :  { %1069 = vmatpush.bf16.msrb.mxu2 %v2919_v57  ;;  %v2822_v46 = vld [vmem:[#allocation2 + $0x2a0] sm:$0xf]  ;;  %v3738_v47 = vld [vmem:[#allocation2 + $0x2a4] sm:$0xf0]  ;;  %v3720_v51 = vld [vmem:[#allocation2 + $0x214] sm:$0xf0]  ;;  %v2951_v52 = vor.u32 %v3770_v45, %v2950_v44 }
  0x35   :  { %1083 = vmatpush.bf16.msrb.mxu3 %v2983_v62  ;;  %v2878_v53 = vld [vmem:[#allocation2 + $0x310] sm:$0xf]  ;;  %v3752_v54 = vld [vmem:[#allocation2 + $0x314] sm:$0xf0]  ;;  %v2823_v56 = vor.u32 %v3738_v47, %v2822_v46  ;;  %v2742_v61 = vld [vmem:[#allocation2 + $0x200] sm:$0xf]  ;;  %v2751_v1 = vor.u32 %v3720_v51, %v2750_v50 }
  0x36   :  { %1055 = vmatpush.bf16.msrb.mxu1 %v2855_v3  ;;  %v2942_v55 = vld [vmem:[#allocation2 + $0x390] sm:$0xf]  ;;  %v3768_v57 = vld [vmem:[#allocation2 + $0x394] sm:$0xf0]  ;;  %v3718_v62 = vld [vmem:[#allocation2 + $0x204] sm:$0xf0]  ;;  %v2879_v3 = vor.u32 %v3752_v54, %v2878_v53 }
  0x37   :  { %1042 = vmatpush.bf16.msrb.mxu0 %v2783_v11  ;;  %v2814_v58 = vld [vmem:[#allocation2 + $0x290] sm:$0xf]  ;;  %v3736_v59 = vld [vmem:[#allocation2 + $0x294] sm:$0xf0]  ;;  %v2870_v63 = vld [vmem:[#allocation2 + $0x300] sm:$0xf]  ;;  %v2943_v7 = vor.u32 %v3768_v57, %v2942_v55  ;;  %v2743_v20 = vor.u32 %v3718_v62, %v2742_v61 }
  0x38   :  { %1070 = vmatpush.bf16.msrb.mxu2 %v2911_v12  ;;  %v3750_v0 = vld [vmem:[#allocation2 + $0x304] sm:$0xf0]  ;;  %v2934_v4 = vld [vmem:[#allocation2 + $0x380] sm:$0xf]  ;;  %v3054_v6 = vld [vmem:[#allocation2 + $0x470] sm:$0xf]  ;;  %v2815_v12 = vor.u32 %v3736_v59, %v2814_v58 }
  0x39   :  { %1084 = vmatpush.bf16.msrb.mxu3 %v2975_v15  ;;  %v3766_v5 = vld [vmem:[#allocation2 + $0x384] sm:$0xf0]  ;;  %v3796_v9 = vld [vmem:[#allocation2 + $0x474] sm:$0xf0]  ;;  %v3683_v10 = vld [vmem:[#allocation2 + $0xf4] sm:$0xf]  ;;  %v2871_v21 = vor.u32 %v3750_v0, %v2870_v63 }
  0x3a   :  { %1056 = vmatpush.bf16.msrb.mxu1 %v2847_v19  ;;  %v2608_v11 = vld [vmem:[#allocation2 + $0xf8] sm:$0xf0]  ;;  %v3699_v13 = vld [vmem:[#allocation2 + $0x174] sm:$0xf]  ;;  %v2806_v16 = vld [vmem:[#allocation2 + $0x280] sm:$0xf]  ;;  %v3055_v26 = vor.u32 %v3796_v9, %v3054_v6 }
  0x3b   :  { %1043 = vmatpush.bf16.msrb.mxu0 %v2775_v24  ;;  %v2672_v15 = vld [vmem:[#allocation2 + $0x178] sm:$0xf0]  ;;  %v3734_v17 = vld [vmem:[#allocation2 + $0x284] sm:$0xf0]  ;;  %v2466_v18 = vld [vmem:[%s4413_s0 + $0x10] sm:$0xf]  ;;  %v2611_v30 = vor.u32 %v3683_v10, %v2608_v11 }
  0x3c   :  { %1071 = vmatpush.bf16.msrb.mxu2 %v2903_v25  ;;  %v3650_v19 = vld [vmem:[%s4413_s0 + $0x30] sm:$0xf0]  ;;  %v2474_v22 = vld [vmem:[%s4413_s0 + $0x18] sm:$0xf]  ;;  %v3651_v23 = vld [vmem:[%s4413_s0 + $0x38] sm:$0xf0]  ;;  %v2935_v25 = vor.u32 %v3766_v5, %v2934_v4  ;;  %v2807_v35 = vor.u32 %v3734_v17, %v2806_v16 }
  0x3d   :  { %1085 = vmatpush.bf16.msrb.mxu3 %v2967_v27  ;;  %v3667_v24 = vld [vmem:[#allocation2 + $0x74] sm:$0xf]  ;;  %v2544_v27 = vld [vmem:[#allocation2 + $0x78] sm:$0xf0]  ;;  %v2476_v32 = vld [vmem:[%s4413_s0 + $0x3c] sm:$0xf0]  ;;  %v4131_v40 = vor.u32 %v3651_v23, %v2474_v22 }
  0x3e   :  { %1057 = vmatpush.bf16.msrb.mxu1 %v2839_v31  ;;  %v3646_v28 = vld [vmem:[%s4413_s0 + $0x14] sm:$0xf]  ;;  %v3647_v29 = vld [vmem:[%s4413_s0 + $0x1c] sm:$0xf]  ;;  %v2675_v31 = vor.u32 %v3699_v13, %v2672_v15  ;;  %v3046_v33 = vld [vmem:[#allocation2 + $0x460] sm:$0xf]  ;;  %v2547_v41 = vor.u32 %v3667_v24, %v2544_v27 }
  0x3f   :  { %1044 = vmatpush.bf16.msrb.mxu0 %v2767_v36  ;;  %v3794_v34 = vld [vmem:[#allocation2 + $0x464] sm:$0xf0]  ;;  %v4126_v36 = vor.u32 %v3650_v19, %v2466_v18  ;;  %v3681_v38 = vld [vmem:[#allocation2 + $0xe4] sm:$0xf]  ;;  %v4133_v44 = vor.u32 %v3647_v29, %v2476_v32  ;;  %v2536_v47 = vld [vmem:[#allocation2 + $0x68] sm:$0xf0] }
  0x40   :  { %1072 = vmatpush.bf16.msrb.mxu2 %v2895_v37  ;;  %v2468_v37 = vld [vmem:[%s4413_s0 + $0x34] sm:$0xf0]  ;;  %v3697_v42 = vld [vmem:[#allocation2 + $0x164] sm:$0xf]  ;;  %v3047_v45 = vor.u32 %v3794_v34, %v3046_v33  ;;  %v3038_v50 = vld [vmem:[#allocation2 + $0x450] sm:$0xf] }
  0x41   :  { %1086 = vmatpush.bf16.msrb.mxu3 %v2959_v39  ;;  %v2600_v39 = vld [vmem:[#allocation2 + $0xe8] sm:$0xf0]  ;;  %v3665_v46 = vld [vmem:[#allocation2 + $0x64] sm:$0xf]  ;;  %v3792_v51 = vld [vmem:[#allocation2 + $0x454] sm:$0xf0] }
  0x42   :  { %1058 = vmatpush.bf16.msrb.mxu1 %v2831_v43  ;;  %v2664_v43 = vld [vmem:[#allocation2 + $0x168] sm:$0xf0]  ;;  %v3679_v53 = vld [vmem:[#allocation2 + $0xd4] sm:$0xf]  ;;  %v2592_v54 = vld [vmem:[#allocation2 + $0xd8] sm:$0xf0]  ;;  %v2539_v55 = vor.u32 %v3665_v46, %v2536_v47  ;;  %v3039_v58 = vor.u32 %v3792_v51, %v3038_v50 }
  0x43   :  { %1045 = vmatpush.bf16.msrb.mxu0 %v2759_v48  ;;  %v4135_v48 = vor.u32 %v3646_v28, %v2468_v37  ;;  %v2656_v57 = vld [vmem:[#allocation2 + $0x158] sm:$0xf0]  ;;  %v3663_v59 = vld [vmem:[#allocation2 + $0x54] sm:$0xf]  ;;  %v2595_v62 = vor.u32 %v3679_v53, %v2592_v54  ;;  %v3030_v63 = vld [vmem:[#allocation2 + $0x440] sm:$0xf] }
  0x44   :  { %1073 = vmatpush.bf16.msrb.mxu2 %v2887_v49  ;;  %v2603_v49 = vor.u32 %v3681_v38, %v2600_v39  ;;  %v2528_v61 = vld [vmem:[#allocation2 + $0x58] sm:$0xf0]  ;;  %v3790_v0 = vld [vmem:[#allocation2 + $0x444] sm:$0xf0]  ;;  %v2584_v4 = vld [vmem:[#allocation2 + $0xc8] sm:$0xf0] }
  0x45   :  { %1087 = vmatpush.bf16.msrb.mxu3 %v2951_v52  ;;  %v2667_v52 = vor.u32 %v3697_v42, %v2664_v43  ;;  %v2531_v5 = vor.u32 %v3663_v59, %v2528_v61  ;;  %v3693_v6 = vld [vmem:[#allocation2 + $0x144] sm:$0xf]  ;;  %v3031_v9 = vor.u32 %v3790_v0, %v3030_v63  ;;  %v2520_v11 = vld [vmem:[#allocation2 + $0x48] sm:$0xf0]  ;;  %v3022_v13 = vld [vmem:[#allocation2 + $0x430] sm:$0xf] }
  0x46   :  { %1059 = vmatpush.bf16.msrb.mxu1 %v2823_v56  ;;  %v3695_v56 = vld [vmem:[#allocation2 + $0x154] sm:$0xf]  ;;  %v3661_v10 = vld [vmem:[#allocation2 + $0x44] sm:$0xf]  ;;  %v3788_v15 = vld [vmem:[#allocation2 + $0x434] sm:$0xf0] }
  0x47   :  { %1046 = vmatpush.bf16.msrb.mxu0 %v2751_v1  ;;  %v2659_v1 = vor.u32 %v3695_v56, %v2656_v57  ;;  %v3675_v17 = vld [vmem:[#allocation2 + $0xb4] sm:$0xf]  ;;  %v2576_v18 = vld [vmem:[#allocation2 + $0xb8] sm:$0xf0]  ;;  %v2523_v19 = vor.u32 %v3661_v10, %v2520_v11  ;;  %v3023_v22 = vor.u32 %v3788_v15, %v3022_v13  ;;  %v3786_v27 = vld [vmem:[#allocation2 + $0x424] sm:$0xf0] }
  0x48   :  { %1074 = vmatpush.bf16.msrb.mxu2 %v2879_v3  ;;  %v3677_v3 = vld [vmem:[#allocation2 + $0xc4] sm:$0xf]  ;;  %v3659_v23 = vld [vmem:[#allocation2 + $0x34] sm:$0xf]  ;;  %v2512_v24 = vld [vmem:[#allocation2 + $0x38] sm:$0xf0] }
  0x49   :  { %1088 = vmatpush.bf16.msrb.mxu3 %v2943_v7  ;;  %v2648_v7 = vld [vmem:[#allocation2 + $0x148] sm:$0xf0]  ;;  %v3673_v29 = vld [vmem:[#allocation2 + $0xa4] sm:$0xf]  ;;  %v3006_v39 = vld [vmem:[#allocation2 + $0x410] sm:$0xf] }
  0x4a   :  { %1060 = vmatpush.bf16.msrb.mxu1 %v2815_v12  ;;  %v2587_v12 = vor.u32 %v3677_v3, %v2584_v4  ;;  %v2651_v16 = vor.u32 %v3693_v6, %v2648_v7  ;;  %v3689_v32 = vld [vmem:[#allocation2 + $0x124] sm:$0xf]  ;;  %v2632_v33 = vld [vmem:[#allocation2 + $0x128] sm:$0xf0]  ;;  %v3671_v43 = vld [vmem:[#allocation2 + $0x94] sm:$0xf] }
  0x4b   :  { %1047 = vmatpush.bf16.msrb.mxu0 %v2743_v20  ;;  %v3691_v20 = vld [vmem:[#allocation2 + $0x134] sm:$0xf]  ;;  %v2504_v37 = vld [vmem:[#allocation2 + $0x28] sm:$0xf0]  ;;  %v2635_v42 = vor.u32 %v3689_v32, %v2632_v33  ;;  %v2496_v51 = vld [vmem:[#allocation2 + $0x18] sm:$0xf0] }
  0x4c   :  { %1075 = vmatpush.bf16.msrb.mxu2 %v2871_v21  ;;  %v2640_v21 = vld [vmem:[#allocation2 + $0x138] sm:$0xf0]  ;;  %v3687_v46 = vld [vmem:[#allocation2 + $0x114] sm:$0xf]  ;;  %v2998_v53 = vld [vmem:[#allocation2 + $0x400] sm:$0xf] }
  0x4d   :  { %1089 = vmatpush.bf16.msrb.mxu3 %v2935_v25  ;;  %v2579_v25 = vor.u32 %v3675_v17, %v2576_v18  ;;  %v2643_v28 = vor.u32 %v3691_v20, %v2640_v21  ;;  %v3655_v50 = vld [vmem:[#allocation2 + $0x14] sm:$0xf]  ;;  %v3782_v54 = vld [vmem:[#allocation2 + $0x404] sm:$0xf0]  ;;  %v2552_v57 = vld [vmem:[#allocation2 + $0x88] sm:$0xf0] }
  0x4e   :  { %1061 = vmatpush.bf16.msrb.mxu1 %v2807_v35  ;;  %1048 = vmatmul.bf16.vlgmr.msrb.gmra.mxu0 %v4126_v36  ;;  %v3657_v35 = vld [vmem:[#allocation2 + $0x24] sm:$0xf]  ;;  %v2616_v59 = vld [vmem:[#allocation2 + $0x108] sm:$0xf0]  ;;  %v2736_v63 = vld [vmem:[#allocation2 + $0x1f8] sm:$0xf0]  ;;  %v2999_v6 = vor.u32 %v3782_v54, %v2998_v53 }
  0x4f   :  { %1096 = vmatpush.bf16.msra.mxu0 %v3055_v26  ;;  %1076 = vmatmul.bf16.vlgmr.msrb.gmra.mxu2 %v4131_v40  ;;  %v3014_v26 = vld [vmem:[#allocation2 + $0x420] sm:$0xf]  ;;  %v2507_v47 = vor.u32 %v3657_v35, %v2504_v37  ;;  %v3747_v0 = vld [vmem:[#allocation2 + $0x2f4] sm:$0xf]  ;;  %v2864_v3 = vld [vmem:[#allocation2 + $0x2f8] sm:$0xf0] }
  0x50   :  { %1124 = vmatpush.bf16.msra.mxu2 %v2611_v30  ;;  %1090 = vmatmul.bf16.vlgmr.msrb.gmra.mxu3 %v4133_v44  ;;  %v2568_v30 = vld [vmem:[#allocation2 + $0xa8] sm:$0xf0]  ;;  %v3015_v34 = vor.u32 %v3786_v27, %v3014_v26  ;;  %v3763_v4 = vld [vmem:[#allocation2 + $0x374] sm:$0xf]  ;;  %v3653_v7 = vld [vmem:[#allocation2 + $0x4] sm:$0xf]  ;;  %v2867_v18 = vor.u32 %v3747_v0, %v2864_v3 }
  0x51   :  { %1138 = vmatpush.bf16.msra.mxu3 %v2675_v31  ;;  %1062 = vmatmul.bf16.vlgmr.msrb.gmra.mxu1 %v4135_v48  ;;  %v2515_v31 = vor.u32 %v3659_v23, %v2512_v24  ;;  %v2571_v38 = vor.u32 %v3673_v29, %v2568_v30  ;;  %v2482_v10 = vld [vmem:[%s4413_s0 + $0x20] sm:$0xf]  ;;  %v3652_v13 = vld [vmem:[%s4413_s0 + $0x40] sm:$0xf0]  ;;  %v3731_v15 = vld [vmem:[#allocation2 + $0x274] sm:$0xf] }
  0x52   :  { %1110 = vmatpush.bf16.msra.mxu1 %v2547_v41  ;;  %v3784_v41 = vld [vmem:[#allocation2 + $0x414] sm:$0xf0]  ;;  %v2728_v20 = vld [vmem:[#allocation2 + $0x1e8] sm:$0xf0]  ;;  %v3745_v23 = vld [vmem:[#allocation2 + $0x2e4] sm:$0xf] }
  0x53   :  { %1097 = vmatpush.bf16.msra.mxu0 %v3047_v45  ;;  %v2560_v45 = vld [vmem:[#allocation2 + $0x98] sm:$0xf0]  ;;  %v2856_v24 = vld [vmem:[#allocation2 + $0x2e8] sm:$0xf0]  ;;  %v3761_v27 = vld [vmem:[#allocation2 + $0x364] sm:$0xf] }
  0x54   :  { %1125 = vmatpush.bf16.msra.mxu2 %v2603_v49  ;;  %v2624_v49 = vld [vmem:[#allocation2 + $0x118] sm:$0xf0]  ;;  %v2563_v56 = vor.u32 %v3671_v43, %v2560_v45  ;;  %v3729_v30 = vld [vmem:[#allocation2 + $0x264] sm:$0xf]  ;;  %v2859_v32 = vor.u32 %v3745_v23, %v2856_v24  ;;  %v3711_v33 = vld [vmem:[#allocation2 + $0x1d4] sm:$0xf] }
  0x55   :  { %1139 = vmatpush.bf16.msra.mxu3 %v2667_v52  ;;  %v3007_v52 = vor.u32 %v3784_v41, %v3006_v39  ;;  %v2627_v61 = vor.u32 %v3687_v46, %v2624_v49  ;;  %v3743_v37 = vld [vmem:[#allocation2 + $0x2d4] sm:$0xf]  ;;  %v2784_v46 = vld [vmem:[#allocation2 + $0x258] sm:$0xf0]  ;;  %v3709_v49 = vld [vmem:[#allocation2 + $0x1c4] sm:$0xf] }
  0x56   :  { %1111 = vmatpush.bf16.msra.mxu1 %v2539_v55  ;;  %v3669_v55 = vld [vmem:[#allocation2 + $0x84] sm:$0xf]  ;;  %v3759_v41 = vld [vmem:[#allocation2 + $0x354] sm:$0xf]  ;;  %v2840_v53 = vld [vmem:[#allocation2 + $0x2c8] sm:$0xf0] }
  0x57   :  { %1098 = vmatpush.bf16.msra.mxu0 %v3039_v58  ;;  %v3685_v58 = vld [vmem:[#allocation2 + $0x104] sm:$0xf]  ;;  %v2555_v11 = vor.u32 %v3669_v55, %v2552_v57  ;;  %v3727_v45 = vld [vmem:[#allocation2 + $0x254] sm:$0xf]  ;;  %v2832_v0 = vld [vmem:[#allocation2 + $0x2b8] sm:$0xf0] }
  0x58   :  { %1126 = vmatpush.bf16.msra.mxu2 %v2595_v62  ;;  %v3715_v62 = vld [vmem:[#allocation2 + $0x1f4] sm:$0xf]  ;;  %v2619_v17 = vor.u32 %v3685_v58, %v2616_v59  ;;  %v2787_v54 = vor.u32 %v3727_v45, %v2784_v46  ;;  %v3757_v55 = vld [vmem:[#allocation2 + $0x344] sm:$0xf]  ;;  %v2688_v23 = vld [vmem:[#allocation2 + $0x198] sm:$0xf0] }
  0x59   :  { %1140 = vmatpush.bf16.msra.mxu3 %v2659_v1  ;;  %v2499_v1 = vor.u32 %v3655_v50, %v2496_v51  ;;  %v2712_v50 = vld [vmem:[#allocation2 + $0x1c8] sm:$0xf0]  ;;  %v3725_v58 = vld [vmem:[#allocation2 + $0x244] sm:$0xf]  ;;  %v3755_v3 = vld [vmem:[#allocation2 + $0x334] sm:$0xf] }
  0x5a   :  { %1112 = vmatpush.bf16.msra.mxu1 %v2531_v5  ;;  %v2928_v5 = vld [vmem:[#allocation2 + $0x378] sm:$0xf0]  ;;  %v2715_v57 = vor.u32 %v3709_v49, %v2712_v50  ;;  %v3779_v45 = vld [vmem:[#allocation2 + $0x3f4] sm:$0xf]  ;;  %v3126_v49 = vld [vmem:[%s4416_s3 + $0x70] sm:$0xf] }
  0x5b   :  { %1099 = vmatpush.bf16.msra.mxu0 %v3031_v9  ;;  %v2488_v9 = vld [vmem:[#allocation2 + $0x8] sm:$0xf0]  ;;  %v2931_v21 = vor.u32 %v3763_v4, %v2928_v5  ;;  %v2896_v4 = vld [vmem:[#allocation2 + $0x338] sm:$0xf0]  ;;  %v3814_v50 = vld [vmem:[%s4416_s3 + $0x74] sm:$0xf0] }
  0x5c   :  { %1127 = vmatpush.bf16.msra.mxu2 %v2587_v12  ;;  %v2739_v12 = vor.u32 %v3715_v62, %v2736_v63  ;;  %v2704_v62 = vld [vmem:[#allocation2 + $0x1b8] sm:$0xf0]  ;;  %v3739_v63 = vld [vmem:[#allocation2 + $0x2b4] sm:$0xf] }
  0x5d   :  { %1141 = vmatpush.bf16.msra.mxu3 %v2651_v16  ;;  %v2800_v16 = vld [vmem:[#allocation2 + $0x278] sm:$0xf0] }
  0x5e   :  { %1113 = vmatpush.bf16.msra.mxu1 %v2523_v19  ;;  %v3713_v19 = vld [vmem:[#allocation2 + $0x1e4] sm:$0xf]  ;;  %v2803_v26 = vor.u32 %v3731_v15, %v2800_v16  ;;  %v2992_v46 = vld [vmem:[#allocation2 + $0x3f8] sm:$0xf0] }
  0x5f   :  { %1100 = vmatpush.bf16.msra.mxu0 %v3023_v22  ;;  %v2491_v22 = vor.u32 %v3653_v7, %v2488_v9  ;;  %v2731_v29 = vor.u32 %v3713_v19, %v2728_v20  ;;  %v2835_v7 = vor.u32 %v3739_v63, %v2832_v0  ;;  %v3705_v9 = vld [vmem:[#allocation2 + $0x1a4] sm:$0xf]  ;;  %v2760_v20 = vld [vmem:[#allocation2 + $0x228] sm:$0xf0] }
  0x60   :  { %1128 = vmatpush.bf16.msra.mxu2 %v2579_v25  ;;  %v4147_v25 = vor.u32 %v3652_v13, %v2482_v10  ;;  %v2696_v10 = vld [vmem:[#allocation2 + $0x1a8] sm:$0xf0]  ;;  %v3753_v16 = vld [vmem:[#allocation2 + $0x324] sm:$0xf] }
  0x61   :  { %1142 = vmatpush.bf16.msra.mxu3 %v2643_v28  ;;  %v2920_v28 = vld [vmem:[#allocation2 + $0x368] sm:$0xf0]  ;;  %v3721_v19 = vld [vmem:[#allocation2 + $0x224] sm:$0xf] }
  0x62   :  { %1114 = vmatpush.bf16.msra.mxu1 %v2515_v31  ;;  %v2792_v31 = vld [vmem:[#allocation2 + $0x268] sm:$0xf0]  ;;  %v2923_v35 = vor.u32 %v3761_v27, %v2920_v28  ;;  %v2816_v27 = vld [vmem:[#allocation2 + $0x298] sm:$0xf0]  ;;  %v2763_v28 = vor.u32 %v3721_v19, %v2760_v20  ;;  %v3777_v63 = vld [vmem:[#allocation2 + $0x3e4] sm:$0xf] }
  0x63   :  { %1101 = vmatpush.bf16.msra.mxu0 %v3015_v34  ;;  %v2720_v34 = vld [vmem:[#allocation2 + $0x1d8] sm:$0xf0]  ;;  %v2795_v39 = vor.u32 %v3729_v30, %v2792_v31  ;;  %v2824_v13 = vld [vmem:[#allocation2 + $0x2a8] sm:$0xf0]  ;;  %v3719_v31 = vld [vmem:[#allocation2 + $0x214] sm:$0xf] }
  0x64   :  { %1129 = vmatpush.bf16.msra.mxu2 %v2571_v38  ;;  %v2848_v38 = vld [vmem:[#allocation2 + $0x2d8] sm:$0xf0]  ;;  %v2723_v43 = vor.u32 %v3711_v33, %v2720_v34  ;;  %v3701_v34 = vld [vmem:[#allocation2 + $0x184] sm:$0xf]  ;;  %v2984_v0 = vld [vmem:[#allocation2 + $0x3e8] sm:$0xf0] }
  0x65   :  { %1143 = vmatpush.bf16.msra.mxu3 %v2635_v42  ;;  %v2912_v42 = vld [vmem:[#allocation2 + $0x358] sm:$0xf0] }
  0x66   :  { %1115 = vmatpush.bf16.msra.mxu1 %v2507_v47  ;;  %v2851_v47 = vor.u32 %v3743_v37, %v2848_v38  ;;  %v2915_v51 = vor.u32 %v3759_v41, %v2912_v42  ;;  %v2880_v30 = vld [vmem:[#allocation2 + $0x318] sm:$0xf0]  ;;  %v3733_v38 = vld [vmem:[#allocation2 + $0x284] sm:$0xf] }
  0x67   :  { %1102 = vmatpush.bf16.msra.mxu0 %v3007_v52  ;;  %v3741_v52 = vld [vmem:[#allocation2 + $0x2c4] sm:$0xf]  ;;  %v2752_v33 = vld [vmem:[#allocation2 + $0x218] sm:$0xf0] }
  0x68   :  { %1130 = vmatpush.bf16.msra.mxu2 %v2563_v56  ;;  %v2904_v56 = vld [vmem:[#allocation2 + $0x348] sm:$0xf0]  ;;  %v2843_v59 = vor.u32 %v3741_v52, %v2840_v53  ;;  %v3749_v41 = vld [vmem:[#allocation2 + $0x304] sm:$0xf]  ;;  %v3128_v53 = vld [vmem:[%s4416_s3 + $0x78] sm:$0xf0] }
  0x69   :  { %1144 = vmatpush.bf16.msra.mxu3 %v2627_v61  ;;  %v3707_v61 = vld [vmem:[#allocation2 + $0x1b4] sm:$0xf]  ;;  %v3040_v20 = vld [vmem:[#allocation2 + $0x458] sm:$0xf0] }
  0x6a   :  { %1116 = vmatpush.bf16.msra.mxu1 %v2499_v1  ;;  %v2707_v5 = vor.u32 %v3707_v61, %v2704_v62  ;;  %v3056_v61 = vld [vmem:[#allocation2 + $0x478] sm:$0xf0] }
  0x6b   :  { %1103 = vmatpush.bf16.msra.mxu0 %v2999_v6  ;;  %v3723_v6 = vld [vmem:[#allocation2 + $0x234] sm:$0xf] }
  0x6c   :  { %1131 = vmatpush.bf16.msra.mxu2 %v2555_v11  ;;  %v2899_v11 = vor.u32 %v3755_v3, %v2896_v4  ;;  %v3812_v3 = vld [vmem:[%s4416_s3 + $0x64] sm:$0xf0]  ;;  %v3811_v4 = vld [vmem:[%s4416_s3 + $0x64] sm:$0xf] }
  0x6d   :  { %1145 = vmatpush.bf16.msra.mxu3 %v2619_v17  ;;  %v2888_v17 = vld [vmem:[#allocation2 + $0x328] sm:$0xf0] }
  0x6e   :  { %1117 = vmatpush.bf16.msra.mxu1 %v2491_v22  ;;  %1104 = vmatmul.bf16.vlgmr.msra.gmra.mxu0 %v4147_v25  ;;  %v3703_v22 = vld [vmem:[#allocation2 + $0x194] sm:$0xf]  ;;  %v2891_v24 = vor.u32 %v3753_v16, %v2888_v17  ;;  %v3810_v16 = vld [vmem:[%s4416_s3 + $0x54] sm:$0xf0] }
  0x6f   :  { %1152 = vmatpush.bf16.msrb.mxu0 %v2739_v12  ;;  %1132 = vmatmul.bf16.vlgmr.msra.gmra.mxu2 %v4093_v8  ;;  %v2776_v8 = vld [vmem:[#allocation2 + $0x248] sm:$0xf0]  ;;  %v3737_v12 = vld [vmem:[#allocation2 + $0x2a4] sm:$0xf]  ;;  %v3809_v17 = vld [vmem:[%s4416_s3 + $0x54] sm:$0xf] }
  0x70   :  { %1180 = vmatpush.bf16.msrb.mxu2 %v2867_v18  ;;  %1146 = vmatmul.bf16.vlgmr.msra.gmra.mxu3 %v4083_v2  ;;  %v2779_v1 = vor.u32 %v3725_v58, %v2776_v8  ;;  %v2768_v2 = vld [vmem:[#allocation2 + $0x238] sm:$0xf0]  ;;  %v2699_v18 = vor.u32 %v3705_v9, %v2696_v10  ;;  %v3127_v8 = vor.u32 %v3814_v50, %v3126_v49  ;;  %v3048_v9 = vld [vmem:[#allocation2 + $0x468] sm:$0xf0]  ;;  %v3769_v50 = vld [vmem:[#allocation2 + $0x3a4] sm:$0xf] }
  0x71   :  { %1194 = vmatpush.bf16.msrb.mxu3 %v2931_v21  ;;  %1118 = vmatmul.bf16.vlgmr.msra.gmra.mxu1 %v4078_v60  ;;  %v2907_v60 = vor.u32 %v3757_v55, %v2904_v56  ;;  %v2771_v15 = vor.u32 %v3723_v6, %v2768_v2  ;;  %v2827_v21 = vor.u32 %v3737_v12, %v2824_v13  ;;  %v2744_v55 = vld [vmem:[#allocation2 + $0x208] sm:$0xf0]  ;;  %v3775_v12 = vld [vmem:[#allocation2 + $0x3d4] sm:$0xf]  ;;  %v2976_v13 = vld [vmem:[#allocation2 + $0x3d8] sm:$0xf0] }
  0x72   :  { %1166 = vmatpush.bf16.msrb.mxu1 %v2803_v26  ;;  %v3735_v26 = vld [vmem:[#allocation2 + $0x294] sm:$0xf]  ;;  %v2987_v2 = vor.u32 %v3777_v63, %v2984_v0  ;;  %v3078_v63 = vld [vmem:[%s4416_s3 + $0x10] sm:$0xf]  ;;  %v3802_v0 = vld [vmem:[%s4416_s3 + $0x14] sm:$0xf0] }
  0x73   :  { %1153 = vmatpush.bf16.msrb.mxu0 %v2731_v29  ;;  %v3751_v29 = vld [vmem:[#allocation2 + $0x314] sm:$0xf]  ;;  %v2819_v37 = vor.u32 %v3735_v26, %v2816_v27  ;;  %v3102_v26 = vld [vmem:[%s4416_s3 + $0x40] sm:$0xf]  ;;  %v3104_v27 = vld [vmem:[%s4416_s3 + $0x48] sm:$0xf0] }
  0x74   :  { %1181 = vmatpush.bf16.msrb.mxu2 %v2859_v32  ;;  %v2691_v32 = vor.u32 %v3703_v22, %v2688_v23  ;;  %v2883_v42 = vor.u32 %v3751_v29, %v2880_v30  ;;  %v3773_v23 = vld [vmem:[#allocation2 + $0x3c4] sm:$0xf] }
  0x75   :  { %1195 = vmatpush.bf16.msrb.mxu3 %v2923_v35  ;;  %v2680_v35 = vld [vmem:[#allocation2 + $0x188] sm:$0xf0]  ;;  %v3789_v30 = vld [vmem:[#allocation2 + $0x444] sm:$0xf] }
  0x76   :  { %1167 = vmatpush.bf16.msrb.mxu1 %v2795_v39  ;;  %v2808_v39 = vld [vmem:[#allocation2 + $0x288] sm:$0xf0]  ;;  %v2683_v52 = vor.u32 %v3701_v34, %v2680_v35  ;;  %v3771_v34 = vld [vmem:[#allocation2 + $0x3b4] sm:$0xf]  ;;  %v2960_v35 = vld [vmem:[#allocation2 + $0x3b8] sm:$0xf0] }
  0x77   :  { %1154 = vmatpush.bf16.msrb.mxu0 %v2723_v43  ;;  %v2872_v43 = vld [vmem:[#allocation2 + $0x308] sm:$0xf0]  ;;  %v2811_v56 = vor.u32 %v3733_v38, %v2808_v39  ;;  %v3806_v38 = vld [vmem:[%s4416_s3 + $0x34] sm:$0xf0]  ;;  %v3805_v39 = vld [vmem:[%s4416_s3 + $0x34] sm:$0xf] }
  0x78   :  { %1182 = vmatpush.bf16.msrb.mxu2 %v2851_v47  ;;  %v2755_v47 = vor.u32 %v3719_v31, %v2752_v33  ;;  %v2875_v58 = vor.u32 %v3749_v41, %v2872_v43  ;;  %v3032_v31 = vld [vmem:[#allocation2 + $0x448] sm:$0xf0]  ;;  %v3096_v41 = vld [vmem:[%s4416_s3 + $0x38] sm:$0xf0]  ;;  %v2963_v43 = vor.u32 %v3771_v34, %v2960_v35 }
  0x79   :  { %1196 = vmatpush.bf16.msrb.mxu3 %v2915_v51  ;;  %v3813_v51 = vld [vmem:[%s4416_s3 + $0x74] sm:$0xf]  ;;  %v3099_v49 = vor.u32 %v3805_v39, %v3096_v41 }
  0x7a   :  { %1168 = vmatpush.bf16.msrb.mxu1 %v2787_v54  ;;  %v3717_v54 = vld [vmem:[#allocation2 + $0x204] sm:$0xf]  ;;  %v3131_v62 = vor.u32 %v3813_v51, %v3128_v53  ;;  %v2952_v51 = vld [vmem:[#allocation2 + $0x3a8] sm:$0xf0]  ;;  %v3804_v53 = vld [vmem:[%s4416_s3 + $0x24] sm:$0xf0] }
  0x7b   :  { %1155 = vmatpush.bf16.msrb.mxu0 %v2715_v57  ;;  %v2995_v57 = vor.u32 %v3779_v45, %v2992_v46  ;;  %v3787_v45 = vld [vmem:[#allocation2 + $0x434] sm:$0xf]  ;;  %v3024_v46 = vld [vmem:[#allocation2 + $0x438] sm:$0xf0] }
  0x7c   :  { %1183 = vmatpush.bf16.msrb.mxu2 %v2843_v59  ;;  %v3795_v59 = vld [vmem:[#allocation2 + $0x474] sm:$0xf] }
  0x7d   :  { %1197 = vmatpush.bf16.msrb.mxu3 %v2907_v60  ;;  %v2747_v60 = vor.u32 %v3717_v54, %v2744_v55  ;;  %v3059_v6 = vor.u32 %v3795_v59, %v3056_v61  ;;  %v3803_v54 = vld [vmem:[%s4416_s3 + $0x24] sm:$0xf]  ;;  %v3088_v55 = vld [vmem:[%s4416_s3 + $0x28] sm:$0xf0] }
  0x7e   :  { %1169 = vmatpush.bf16.msrb.mxu1 %v2779_v1  ;;  %v3118_v1 = vld [vmem:[%s4416_s3 + $0x60] sm:$0xf]  ;;  %v3091_v61 = vor.u32 %v3803_v54, %v3088_v55 }
  0x7f   :  { %1156 = vmatpush.bf16.msrb.mxu0 %v2707_v5  ;;  %v3120_v5 = vld [vmem:[%s4416_s3 + $0x68] sm:$0xf0]  ;;  %v3119_v10 = vor.u32 %v3812_v3, %v3118_v1  ;;  %v3801_v1 = vld [vmem:[%s4416_s3 + $0x14] sm:$0xf]  ;;  %v3080_v3 = vld [vmem:[%s4416_s3 + $0x18] sm:$0xf0] }
  0x80   :  { %1184 = vmatpush.bf16.msrb.mxu2 %v2835_v7  ;;  %v3793_v7 = vld [vmem:[#allocation2 + $0x464] sm:$0xf]  ;;  %v3939_v55 = vld [vmem:[#allocation4 + $0x3dc] sm:$0xf0] }
  0x81   :  { %1198 = vmatpush.bf16.msrb.mxu3 %v2899_v11  ;;  %v3123_v11 = vor.u32 %v3811_v4, %v3120_v5  ;;  %v3051_v19 = vor.u32 %v3793_v7, %v3048_v9  ;;  %v3079_v7 = vor.u32 %v3802_v0, %v3078_v63  ;;  %v3083_v9 = vor.u32 %v3801_v1, %v3080_v3  ;;  %v3867_v63 = vld [vmem:[#allocation4 + $0x19c] sm:$0xf0] }
  0x82   :  { %1170 = vmatpush.bf16.msrb.mxu1 %v2771_v15  ;;  %v3110_v15 = vld [vmem:[%s4416_s3 + $0x50] sm:$0xf]  ;;  %v3582_v0 = vld [vmem:[#allocation4 + $0x380] sm:$0xf] }
  0x83   :  { %1157 = vmatpush.bf16.msrb.mxu0 %v2699_v18  ;;  %v3112_v18 = vld [vmem:[%s4416_s3 + $0x58] sm:$0xf0]  ;;  %v3931_v1 = vld [vmem:[#allocation4 + $0x39c] sm:$0xf0] }
  0x84   :  { %1185 = vmatpush.bf16.msrb.mxu2 %v2827_v21  ;;  %v3111_v21 = vor.u32 %v3810_v16, %v3110_v15  ;;  %v3115_v22 = vor.u32 %v3809_v17, %v3112_v18  ;;  %v3799_v15 = vld [vmem:[%s4416_s3 + $0x4] sm:$0xf]  ;;  %v3072_v16 = vld [vmem:[%s4416_s3 + $0x8] sm:$0xf0] }
  0x85   :  { %1199 = vmatpush.bf16.msrb.mxu3 %v2891_v24  ;;  %v2968_v24 = vld [vmem:[#allocation2 + $0x3c8] sm:$0xf0] }
  0x86   :  { %1171 = vmatpush.bf16.msrb.mxu1 %v2763_v28  ;;  %v2971_v29 = vor.u32 %v3773_v23, %v2968_v24  ;;  %v4260_v23 = vld [vmem:[%s4417_s4] sm:$0x3] }
  0x87   :  { %1158 = vmatpush.bf16.msrb.mxu0 %v2691_v32  ;;  %v214_v24 = vperm.slane %v4260_v23, 0 }
  0x88   :  { %1186 = vmatpush.bf16.msrb.mxu2 %v2819_v37  ;;  %v3094_v37 = vld [vmem:[%s4416_s3 + $0x30] sm:$0xf] }
  0x89   :  { %1200 = vmatpush.bf16.msrb.mxu3 %v2883_v42  ;;  %v3035_v42 = vor.u32 %v3789_v30, %v3032_v31 }
  0x8a   :  { %1172 = vmatpush.bf16.msrb.mxu1 %v2755_v47  ;;  %v3095_v47 = vor.u32 %v3806_v38, %v3094_v37 }
  0x8b   :  { %1159 = vmatpush.bf16.msrb.mxu0 %v2683_v52  ;;  %v3086_v52 = vld [vmem:[%s4416_s3 + $0x20] sm:$0xf] }
  0x8c   :  { %1187 = vmatpush.bf16.msrb.mxu2 %v2811_v56  ;;  %v3027_v56 = vor.u32 %v3787_v45, %v3024_v46  ;;  %v3087_v59 = vor.u32 %v3804_v53, %v3086_v52  ;;  %v3875_v52 = vld [vmem:[#allocation4 + $0x1dc] sm:$0xf0] }
  0x8d   :  { %1201 = vmatpush.bf16.msrb.mxu3 %v2875_v58  ;;  %v3785_v58 = vld [vmem:[#allocation2 + $0x424] sm:$0xf]  ;;  %v3614_v53 = vld [vmem:[#allocation4 + $0x3c0] sm:$0xf] }
  0x8e   :  { %1173 = vmatpush.bf16.msrb.mxu1 %v2747_v60  ;;  %1160 = vmatmul.bf16.vlgmr.msrb.gmra.mxu0 %v4101_v14  ;;  %v2979_v14 = vor.u32 %v3775_v12, %v2976_v13  ;;  %v2944_v60 = vld [vmem:[#allocation2 + $0x398] sm:$0xf0]  ;;  %v3070_v12 = vld [vmem:[%s4416_s3] sm:$0xf]  ;;  %v3800_v13 = vld [vmem:[%s4416_s3 + $0x4] sm:$0xf0] }
  0x8f   :  { %1208 = vmatpush.bf16.msra.mxu0 %v2995_v57  ;;  %1188 = vmatmul.bf16.vlgmr.msrb.gmra.mxu2 %v4135_v48  ;;  %v3791_v48 = vld [vmem:[#allocation2 + $0x454] sm:$0xf]  ;;  %v2955_v57 = vor.u32 %v3769_v50, %v2952_v51  ;;  %v3358_v51 = vld [vmem:[#allocation4 + $0x1c0] sm:$0xf] }
  0x90   :  { %1348 = vmatpush.bf16.msra.mxu2 %v3127_v8  ;;  %1202 = vmatmul.bf16.vlgmr.msrb.gmra.mxu3 %v4131_v40  ;;  %v3808_v40 = vld [vmem:[%s4416_s3 + $0x44] sm:$0xf0]  ;;  %v3043_v28 = vor.u32 %v3791_v48, %v3040_v20  ;;  %v3016_v8 = vld [vmem:[#allocation2 + $0x428] sm:$0xf0]  ;;  %v3071_v48 = vor.u32 %v3800_v13, %v3070_v12  ;;  %v3075_v20 = vor.u32 %v3799_v15, %v3072_v16  ;;  %v3550_v13 = vld [vmem:[#allocation4 + $0x340] sm:$0xf] }
  0x91   :  { %1367 = vmatpush.bf16.msra.mxu3 %v3131_v62  ;;  %1174 = vmatmul.bf16.vlgmr.msrb.gmra.mxu1 %v4126_v36  ;;  %v3807_v36 = vld [vmem:[%s4416_s3 + $0x44] sm:$0xf]  ;;  %v3103_v32 = vor.u32 %v3808_v40, %v3102_v26  ;;  %v3767_v62 = vld [vmem:[#allocation2 + $0x394] sm:$0xf]  ;;  %v3019_v4 = vor.u32 %v3785_v58, %v3016_v8  ;;  %v3359_v54 = vor.u32 %v3875_v52, %v3358_v51  ;;  %v3923_v15 = vld [vmem:[#allocation4 + $0x35c] sm:$0xf0] }
  0x92   :  { %1222 = vmatpush.bf16.msra.mxu1 %v3059_v6  ;;  %v3107_v33 = vor.u32 %v3807_v36, %v3104_v27  ;;  %v2947_v5 = vor.u32 %v3767_v62, %v2944_v60  ;;  %v3783_v6 = vld [vmem:[#allocation2 + $0x414] sm:$0xf]  ;;  %v3615_v58 = vor.u32 %v3939_v55, %v3614_v53  ;;  %v3326_v62 = vld [vmem:[#allocation4 + $0x180] sm:$0xf]  ;;  %v3855_v16 = vld [vmem:[#allocation4 + $0x144] sm:$0xf] }
  0x93   :  { %1209 = vmatpush.bf16.msra.mxu0 %v2987_v2  ;;  %v3008_v2 = vld [vmem:[#allocation2 + $0x418] sm:$0xf0]  ;;  %v3327_v3 = vor.u32 %v3867_v63, %v3326_v62  ;;  %v3903_v53 = vld [vmem:[#allocation4 + $0x2c4] sm:$0xf]  ;;  %v3899_v62 = vld [vmem:[#allocation4 + $0x29c] sm:$0xf0] }
  0x94   :  { %1349 = vmatpush.bf16.msra.mxu2 %v3119_v10  ;;  %v3765_v10 = vld [vmem:[#allocation2 + $0x384] sm:$0xf]  ;;  %v3011_v17 = vor.u32 %v3783_v6, %v3008_v2 }
  0x95   :  { %1368 = vmatpush.bf16.msra.mxu3 %v3123_v11  ;;  %v2936_v11 = vld [vmem:[#allocation2 + $0x388] sm:$0xf0]  ;;  %v3328_v6 = vld [vmem:[#allocation4 + $0x1a0] sm:$0xf0] }
  0x96   :  { %1223 = vmatpush.bf16.msra.mxu1 %v3051_v19  ;;  %v2939_v18 = vor.u32 %v3765_v10, %v2936_v11  ;;  %v3781_v19 = vld [vmem:[#allocation2 + $0x404] sm:$0xf]  ;;  %v3294_v10 = vld [vmem:[#allocation4 + $0x140] sm:$0xf] }
  0x97   :  { %1210 = vmatpush.bf16.msra.mxu0 %v2979_v14  ;;  %v3000_v14 = vld [vmem:[#allocation2 + $0x408] sm:$0xf0]  ;;  %v3927_v2 = vld [vmem:[#allocation4 + $0x384] sm:$0xf]  ;;  %v3859_v11 = vld [vmem:[#allocation4 + $0x15c] sm:$0xf0] }
  0x98   :  { %1350 = vmatpush.bf16.msra.mxu2 %v3111_v21  ;;  %v3003_v21 = vor.u32 %v3781_v19, %v3000_v14  ;;  %v3295_v19 = vor.u32 %v3859_v11, %v3294_v10  ;;  %v3296_v14 = vld [vmem:[#allocation4 + $0x160] sm:$0xf0]  ;;  %v3422_v10 = vld [vmem:[#allocation4 + $0x240] sm:$0xf] }
  0x99   :  { %1369 = vmatpush.bf16.msra.mxu3 %v3115_v22  ;;  %v3797_v22 = vld [vmem:[%s4414_s1] sm:$0xff] }
  0x9a   :  { %1224 = vmatpush.bf16.msra.mxu1 %v3043_v28  ;;  %v3798_v28 = vld [vmem:[%s4414_s1 + $0x8] sm:$0xff]  ;;  %v3200_v63 = vld [vmem:[#allocation4 + $0xa0] sm:$0xf0] }
  0x9b   :  { %1211 = vmatpush.bf16.msra.mxu0 %v2971_v29 }
  0x9c   :  { %1351 = vmatpush.bf16.msra.mxu2 %v3103_v32 }
  0x9d   :  { %1370 = vmatpush.bf16.msra.mxu3 %v3107_v33 }
  0x9e   :  { %1225 = vmatpush.bf16.msra.mxu1 %v3035_v42 }
  0x9f   :  { %1212 = vmatpush.bf16.msra.mxu0 %v2963_v43 }
  0xa0   :  { %1352 = vmatpush.bf16.msra.mxu2 %v3095_v47 }
  0xa1   :  { %1371 = vmatpush.bf16.msra.mxu3 %v3099_v49 }
  0xa2   :  { %1226 = vmatpush.bf16.msra.mxu1 %v3027_v56  ;;  %v3871_v56 = vld [vmem:[#allocation4 + $0x1c4] sm:$0xf] }
  0xa3   :  { %1213 = vmatpush.bf16.msra.mxu0 %v2955_v57  ;;  %v3360_v57 = vld [vmem:[#allocation4 + $0x1e0] sm:$0xf0] }
  0xa4   :  { %1353 = vmatpush.bf16.msra.mxu2 %v3087_v59  ;;  %v3363_v8 = vor.u32 %v3871_v56, %v3360_v57  ;;  %v3935_v59 = vld [vmem:[#allocation4 + $0x3c4] sm:$0xf]  ;;  %v3198_v57 = vld [vmem:[#allocation4 + $0x80] sm:$0xf] }
  0xa5   :  { %1372 = vmatpush.bf16.msra.mxu3 %v3091_v61  ;;  %v3616_v61 = vld [vmem:[#allocation4 + $0x3e0] sm:$0xf0] }
  0xa6   :  { %1227 = vmatpush.bf16.msra.mxu1 %v3019_v4  ;;  %v3619_v60 = vor.u32 %v3935_v59, %v3616_v61  ;;  %v3583_v4 = vor.u32 %v3931_v1, %v3582_v0 }
  0xa7   :  { %1214 = vmatpush.bf16.msra.mxu0 %v2947_v5  ;;  %v3863_v5 = vld [vmem:[#allocation4 + $0x184] sm:$0xf] }
  0xa8   :  { %1354 = vmatpush.bf16.msra.mxu2 %v3079_v7  ;;  %v3331_v7 = vor.u32 %v3863_v5, %v3328_v6 }
  0xa9   :  { %1373 = vmatpush.bf16.msra.mxu3 %v3083_v9  ;;  %v3584_v9 = vld [vmem:[#allocation4 + $0x3a0] sm:$0xf0] }
  0xaa   :  { %1228 = vmatpush.bf16.msra.mxu1 %v3011_v17  ;;  %v3587_v12 = vor.u32 %v3927_v2, %v3584_v9  ;;  %v3827_v9 = vld [vmem:[#allocation4 + $0x5c] sm:$0xf0] }
  0xab   :  { %1215 = vmatpush.bf16.msra.mxu0 %v2939_v18  ;;  %v993_v26 = vpop.f32.mrf.mxu0 }
  0xac   :  { %1355 = vmatpush.bf16.msra.mxu2 %v3071_v48  ;;  %v994_v40 = vadd.f32 %v993_v26, %v214_v24  ;;  %v3919_v48 = vld [vmem:[#allocation4 + $0x344] sm:$0xf] }
  0xad   :  { %1374 = vmatpush.bf16.msra.mxu3 %v3075_v20  ;;  %v3552_v20 = vld [vmem:[#allocation4 + $0x360] sm:$0xf0] }
  0xae   :  { %1229 = vmatpush.bf16.msra.mxu1 %v3003_v21  ;;  %1216 = vmatmul.bf16.vlgmr.msra.gmra.mxu0 %v4133_v44  ;;  %v1007_v36 = vpop.f32.mrf.mxu1  ;;  %v3551_v21 = vor.u32 %v3923_v15, %v3550_v13  ;;  %v3823_v13 = vld [vmem:[#allocation4 + $0x44] sm:$0xf] }
  0xaf   :  { %1356 = vmatmul.bf16.vlgmr.msra.gmra.mxu2 %v3797_v22  ;;  %v1008_v27 = vadd.f32 %v1007_v36, %v994_v40  ;;  %2202 = vmatpush.bf16.msrb.mxu0 %v3359_v54  ;;  %v3262_v40 = vld [vmem:[#allocation4 + $0x100] sm:$0xf]  ;;  %v3488_v54 = vld [vmem:[#allocation4 + $0x2e0] sm:$0xf0] }
  0xb0   :  { %1375 = vmatmul.bf16.vlgmr.msra.gmra.mxu3 %v3797_v22  ;;  %2230 = vmatpush.bf16.msrb.mxu2 %v3363_v8  ;;  %v3299_v22 = vor.u32 %v3855_v16, %v3296_v14  ;;  %v3851_v36 = vld [vmem:[#allocation4 + $0x11c] sm:$0xf0]  ;;  %v3491_v55 = vor.u32 %v3903_v53, %v3488_v54  ;;  %v3168_v15 = vld [vmem:[#allocation4 + $0x60] sm:$0xf0]  ;;  %v3624_v54 = vld [vmem:[#allocation4 + $0x3e8] sm:$0xf0] }
  0xb1   :  { %1230 = vmatmul.bf16.vlgmr.msra.gmra.mxu1 %v4147_v25  ;;  %2244 = vmatpush.bf16.msrb.mxu3 %v3619_v60  ;;  %v3454_v8 = vld [vmem:[#allocation4 + $0x280] sm:$0xf]  ;;  %v3831_v60 = vld [vmem:[#allocation4 + $0x84] sm:$0xf] }
  0xb2   :  { %v1021_v44 = vpop.f32.mrf.mxu2  ;;  %2216 = vmatpush.bf16.msrb.mxu1 %v3615_v58  ;;  %v3835_v58 = vld [vmem:[#allocation4 + $0x9c] sm:$0xf0]  ;;  %v3455_v0 = vor.u32 %v3899_v62, %v3454_v8  ;;  %v3203_v1 = vor.u32 %v3831_v60, %v3200_v63  ;;  %v3887_v14 = vld [vmem:[#allocation4 + $0x244] sm:$0xf]  ;;  %v3590_v60 = vld [vmem:[#allocation4 + $0x388] sm:$0xf] }
  0xb3   :  { %v1022_v29 = vadd.f32 %v1021_v44, %v1008_v27  ;;  %v995_v30 = vpop.f32.mrf.mxu0  ;;  %v1035_v32 = vpop.f32.mrf.mxu3  ;;  %2203 = vmatpush.bf16.msrb.mxu0 %v3327_v3  ;;  %v3518_v27 = vld [vmem:[#allocation4 + $0x300] sm:$0xf]  ;;  %v3199_v61 = vor.u32 %v3835_v58, %v3198_v57  ;;  %v3895_v3 = vld [vmem:[#allocation4 + $0x284] sm:$0xf]  ;;  %v3868_v57 = vld [vmem:[#allocation4 + $0x1a4] sm:$0xf0] }
  0xb4   :  { %v996_v31 = vadd.f32 %v995_v30, %v214_v24  ;;  %2231 = vmatpush.bf16.msrb.mxu2 %v3331_v7  ;;  %v3555_v24 = vor.u32 %v3919_v48, %v3552_v20  ;;  %v3915_v44 = vld [vmem:[#allocation4 + $0x31c] sm:$0xf0]  ;;  %v3264_v30 = vld [vmem:[#allocation4 + $0x120] sm:$0xf0]  ;;  %v215_v20 = vperm.slane %v4260_v23, 1 }
  0xb5   :  { %v1036_v33 = vadd.f32 %v1035_v32, %v1022_v29  ;;  %2245 = vmatpush.bf16.msrb.mxu3 %v3587_v12  ;;  %v3847_v29 = vld [vmem:[#allocation4 + $0x104] sm:$0xf]  ;;  %v3519_v32 = vor.u32 %v3915_v44, %v3518_v27  ;;  %v3166_v7 = vld [vmem:[#allocation4 + $0x40] sm:$0xf]  ;;  %v3932_v63 = vld [vmem:[#allocation4 + $0x3a4] sm:$0xf0] }
  0xb6   :  { %v1009_v34 = vpop.f32.mrf.mxu1  ;;  %2217 = vmatpush.bf16.msrb.mxu1 %v3583_v4  ;;  %v3456_v4 = vld [vmem:[#allocation4 + $0x2a0] sm:$0xf0]  ;;  %v3167_v11 = vor.u32 %v3827_v9, %v3166_v7  ;;  %v3891_v12 = vld [vmem:[#allocation4 + $0x25c] sm:$0xf0] }
  0xb7   :  { %v1010_v25 = vadd.f32 %v1009_v34, %v996_v31  ;;  %2204 = vmatpush.bf16.msrb.mxu0 %v3295_v19  ;;  %v3911_v34 = vld [vmem:[#allocation4 + $0x304] sm:$0xf]  ;;  %v3459_v5 = vor.u32 %v3895_v3, %v3456_v4  ;;  %v3423_v16 = vor.u32 %v3891_v12, %v3422_v10  ;;  %v3171_v19 = vor.u32 %v3823_v13, %v3168_v15  ;;  %v3336_v3 = vld [vmem:[#allocation4 + $0x1a8] sm:$0xf0]  ;;  %v3860_v12 = vld [vmem:[#allocation4 + $0x164] sm:$0xf0] }
  0xb8   :  { %2232 = vmatpush.bf16.msrb.mxu2 %v3299_v22  ;;  %v3424_v48 = vld [vmem:[#allocation4 + $0x260] sm:$0xf0]  ;;  %v3134_v22 = vld [vmem:[#allocation4] sm:$0xf]  ;;  %v3928_v4 = vld [vmem:[#allocation4 + $0x38c] sm:$0xf] }
  0xb9   :  { %2246 = vmatpush.bf16.msrb.mxu3 %v3555_v24  ;;  %v3819_v24 = vld [vmem:[#allocation4 + $0x1c] sm:$0xf0]  ;;  %v3815_v44 = vld [vmem:[#allocation4 + $0x4] sm:$0xf]  ;;  %v3558_v13 = vld [vmem:[#allocation4 + $0x348] sm:$0xf] }
  0xba   :  { %v1023_v35 = vpop.f32.mrf.mxu2  ;;  %2218 = vmatpush.bf16.msrb.mxu1 %v3551_v21  ;;  %v3427_v21 = vor.u32 %v3887_v14, %v3424_v48  ;;  %v3135_v27 = vor.u32 %v3819_v24, %v3134_v22  ;;  %v3856_v14 = vld [vmem:[#allocation4 + $0x14c] sm:$0xf] }
  0xbb   :  { %v1024_v37 = vadd.f32 %v1023_v35, %v1010_v25  ;;  %v1037_v38 = vpop.f32.mrf.mxu3  ;;  %v3520_v25 = vld [vmem:[#allocation4 + $0x320] sm:$0xf0]  ;;  %v3304_v48 = vld [vmem:[#allocation4 + $0x168] sm:$0xf0] }
  0xbc   :  { %v3307_v22 = vor.u32 %v3856_v14, %v3304_v48  ;;  %v3920_v24 = vld [vmem:[#allocation4 + $0x34c] sm:$0xf] }
  0xbd   :  { %v4267_v39 = vadd.f32 %v1037_v38, %v1024_v37  ;;  %v3523_v38 = vor.u32 %v3911_v34, %v3520_v25  ;;  %v3392_v34 = vld [vmem:[#allocation4 + $0x220] sm:$0xf0]  ;;  %v3366_v25 = vld [vmem:[#allocation4 + $0x1c8] sm:$0xf]  ;;  %v3464_v14 = vld [vmem:[#allocation4 + $0x2a8] sm:$0xf0] }
  0xbe   :  { %2219 = vmatpush.bf16.msrb.mxu1 %v3519_v32 }
  0xbf   :  { %1361 = vmatmul.bf16.gmra.mxu2 %v3798_v28  ;;  %2247 = vmatpush.bf16.msrb.mxu3 %v3523_v38 }
  0xc0   :  { %1380 = vmatmul.bf16.gmra.mxu3 %v3798_v28  ;;  %v3263_v28 = vor.u32 %v3851_v36, %v3262_v40  ;;  %v3390_v40 = vld [vmem:[#allocation4 + $0x200] sm:$0xf] }
  0xc2   :  { %2205 = vmatpush.bf16.msrb.mxu0 %v3263_v28  ;;  %v3883_v28 = vld [vmem:[#allocation4 + $0x21c] sm:$0xf0] }
  0xc3   :  { %2248 = vmatpush.bf16.msrb.mxu3 %v3491_v55  ;;  %v3334_v55 = vld [vmem:[#allocation4 + $0x188] sm:$0xf] }
  0xc4   :  { %v3335_v62 = vor.u32 %v3868_v57, %v3334_v55  ;;  %v3908_v57 = vld [vmem:[#allocation4 + $0x2e4] sm:$0xf0] }
  0xc7   :  { %2249 = vmatpush.bf16.msrb.mxu3 %v3459_v5  ;;  %v3592_v5 = vld [vmem:[#allocation4 + $0x3a8] sm:$0xf0] }
  0xc8   :  { %v3595_v9 = vor.u32 %v3928_v4, %v3592_v5  ;;  %v3836_v4 = vld [vmem:[#allocation4 + $0xa4] sm:$0xf0] }
  0xc9   :  { %v3462_v5 = vld [vmem:[#allocation4 + $0x288] sm:$0xf] }
  0xcb   :  { %v1049_v41 = vpop.f32.mrf.mxu0  ;;  %2250 = vmatpush.bf16.msrb.mxu3 %v3427_v21 }
  0xcc   :  { %v1050_v42 = vadd.f32 %v1049_v41, %v1036_v33  ;;  %v3267_v33 = vor.u32 %v3847_v29, %v3264_v30  ;;  %v3230_v41 = vld [vmem:[#allocation4 + $0xc0] sm:$0xf]  ;;  %v3136_v29 = vld [vmem:[#allocation4 + $0x20] sm:$0xf0]  ;;  %v3391_v30 = vor.u32 %v3883_v28, %v3390_v40  ;;  %v3560_v40 = vld [vmem:[#allocation4 + $0x368] sm:$0xf0] }
  0xcd   :  { %v3139_v32 = vor.u32 %v3815_v44, %v3136_v29  ;;  %v3270_v44 = vld [vmem:[#allocation4 + $0x108] sm:$0xf] }
  0xce   :  { %v1063_v43 = vpop.f32.mrf.mxu1  ;;  %2233 = vmatpush.bf16.msrb.mxu2 %v3267_v33  ;;  %v3879_v33 = vld [vmem:[#allocation4 + $0x204] sm:$0xf]  ;;  %v3852_v29 = vld [vmem:[#allocation4 + $0x124] sm:$0xf0] }
  0xcf   :  { %v1064_v45 = vadd.f32 %v1063_v43, %v1050_v42  ;;  %v3843_v42 = vld [vmem:[#allocation4 + $0xdc] sm:$0xf0] }
  0xd0   :  { %v3486_v43 = vld [vmem:[#allocation4 + $0x2c0] sm:$0xf] }
  0xd2   :  { %v1077_v46 = vpop.f32.mrf.mxu2 }
  0xd3   :  { %v1078_v47 = vadd.f32 %v1077_v46, %v1064_v45  ;;  %v1091_v49 = vpop.f32.mrf.mxu3  ;;  %v4275_v26 = vpop.f32.mrf.mxu0  ;;  %v3231_v45 = vor.u32 %v3843_v42, %v3230_v41  ;;  %v3907_v46 = vld [vmem:[#allocation4 + $0x2dc] sm:$0xf0]  ;;  %v3395_v41 = vor.u32 %v3879_v33, %v3392_v34  ;;  %v3876_v42 = vld [vmem:[#allocation4 + $0x1e4] sm:$0xf0]  ;;  %v3848_v34 = vld [vmem:[#allocation4 + $0x10c] sm:$0xf] }
  0xd4   :  { %v3487_v51 = vor.u32 %v3907_v46, %v3486_v43  ;;  %v3622_v43 = vld [vmem:[#allocation4 + $0x3c8] sm:$0xf]  ;;  %v3367_v46 = vor.u32 %v3876_v42, %v3366_v25  ;;  %v3272_v25 = vld [vmem:[#allocation4 + $0x128] sm:$0xf0] }
  0xd5   :  { %v4269_v50 = vadd.f32 %v1091_v49, %v1078_v47  ;;  %v3839_v47 = vld [vmem:[#allocation4 + $0xc4] sm:$0xf]  ;;  %2206 = vmatpush.bf16.msrb.mxu0 %v3231_v45  ;;  %v3940_v45 = vld [vmem:[#allocation4 + $0x3e4] sm:$0xf0]  ;;  %2251 = vmatpush.bf16.msrb.mxu3 %v3395_v41  ;;  %v3275_v42 = vor.u32 %v3848_v34, %v3272_v25  ;;  %v3888_v34 = vld [vmem:[#allocation4 + $0x24c] sm:$0xf] }
  0xd6   :  { %v4277_v31 = vpop.f32.mrf.mxu1  ;;  %v3232_v49 = vld [vmem:[#allocation4 + $0xe0] sm:$0xf0]  ;;  %2220 = vmatpush.bf16.msrb.mxu1 %v3487_v51  ;;  %v3368_v51 = vld [vmem:[#allocation4 + $0x1e8] sm:$0xf0]  ;;  %v3916_v33 = vld [vmem:[#allocation4 + $0x324] sm:$0xf0] }
  0xd7   :  { %v3235_v52 = vor.u32 %v3839_v47, %v3232_v49  ;;  %v3623_v47 = vor.u32 %v3940_v45, %v3622_v43  ;;  %v3872_v49 = vld [vmem:[#allocation4 + $0x1cc] sm:$0xf] }
  0xd8   :  { %v3371_v53 = vor.u32 %v3872_v49, %v3368_v51  ;;  %v3912_v43 = vld [vmem:[#allocation4 + $0x30c] sm:$0xf]  ;;  %v3238_v51 = vld [vmem:[#allocation4 + $0xc8] sm:$0xf] }
  0xd9   :  { %2234 = vmatpush.bf16.msrb.mxu2 %v3235_v52  ;;  %2207 = vmatpush.bf16.msrb.mxu0 %v3199_v61  ;;  %v3936_v52 = vld [vmem:[#allocation4 + $0x3cc] sm:$0xf] }
  0xda   :  { %v4271_v17 = vpop.f32.mrf.mxu2  ;;  %2221 = vmatpush.bf16.msrb.mxu1 %v3455_v0  ;;  %v3627_v61 = vor.u32 %v3936_v52, %v3624_v54  ;;  %v3864_v0 = vld [vmem:[#allocation4 + $0x18c] sm:$0xf]  ;;  %v3844_v52 = vld [vmem:[#allocation4 + $0xe4] sm:$0xf0] }
  0xdb   :  { %v4273_v18 = vpop.f32.mrf.mxu3  ;;  %v3339_v7 = vor.u32 %v3864_v0, %v3336_v3  ;;  %v3528_v45 = vld [vmem:[#allocation4 + $0x328] sm:$0xf0]  ;;  %v3239_v55 = vor.u32 %v3844_v52, %v3238_v51  ;;  %v3206_v3 = vld [vmem:[#allocation4 + $0x88] sm:$0xf] }
  0xdc   :  { %2300 = vmatpush.bf16.msra.mxu3 %v3627_v61  ;;  %v3840_v61 = vld [vmem:[#allocation4 + $0xcc] sm:$0xf]  ;;  %v3884_v51 = vld [vmem:[#allocation4 + $0x224] sm:$0xf0] }
  0xdd   :  { %2235 = vmatpush.bf16.msrb.mxu2 %v3203_v1  ;;  %2208 = vmatpush.bf16.msrb.mxu0 %v3167_v11  ;;  %v3591_v1 = vor.u32 %v3932_v63, %v3590_v60  ;;  %v3302_v11 = vld [vmem:[#allocation4 + $0x148] sm:$0xf]  ;;  %v3904_v60 = vld [vmem:[#allocation4 + $0x2cc] sm:$0xf] }
  0xde   :  { %2222 = vmatpush.bf16.msrb.mxu1 %v3423_v16  ;;  %v3303_v16 = vor.u32 %v3860_v12, %v3302_v11  ;;  %v3496_v63 = vld [vmem:[#allocation4 + $0x2e8] sm:$0xf0] }
  0xdf   :  { %v3832_v11 = vld [vmem:[#allocation4 + $0x8c] sm:$0xf] }
  0xe0   :  { %2301 = vmatpush.bf16.msra.mxu3 %v3595_v9  ;;  %v3900_v9 = vld [vmem:[#allocation4 + $0x2a4] sm:$0xf0]  ;;  %v3208_v12 = vld [vmem:[#allocation4 + $0xa8] sm:$0xf0] }
  0xe1   :  { %2236 = vmatpush.bf16.msrb.mxu2 %v3171_v19  ;;  %2209 = vmatpush.bf16.msrb.mxu0 %v3135_v27  ;;  %v3924_v19 = vld [vmem:[#allocation4 + $0x364] sm:$0xf0]  ;;  %v3563_v27 = vor.u32 %v3920_v24, %v3560_v40  ;;  %v3432_v25 = vld [vmem:[#allocation4 + $0x268] sm:$0xf0] }
  0xe2   :  { %2223 = vmatpush.bf16.msrb.mxu1 %v3391_v30  ;;  %v3559_v21 = vor.u32 %v3924_v19, %v3558_v13  ;;  %v3526_v30 = vld [vmem:[#allocation4 + $0x308] sm:$0xf]  ;;  %v3896_v19 = vld [vmem:[#allocation4 + $0x28c] sm:$0xf] }
  0xe3   :  { %v3527_v41 = vor.u32 %v3916_v33, %v3526_v30  ;;  %v3828_v24 = vld [vmem:[#allocation4 + $0x64] sm:$0xf0]  ;;  %v3824_v30 = vld [vmem:[#allocation4 + $0x4c] sm:$0xf] }
  0xe4   :  { %2302 = vmatpush.bf16.msra.mxu3 %v3563_v27  ;;  %v3430_v40 = vld [vmem:[#allocation4 + $0x248] sm:$0xf]  ;;  %v3816_v52 = vld [vmem:[#allocation4 + $0xc] sm:$0xf] }
  0xe5   :  { %2237 = vmatpush.bf16.msrb.mxu2 %v3139_v32  ;;  %2258 = vmatpush.bf16.msra.mxu0 %v3367_v46  ;;  %v3271_v32 = vor.u32 %v3852_v29, %v3270_v44  ;;  %v3892_v29 = vld [vmem:[#allocation4 + $0x264] sm:$0xf0] }
  0xe6   :  { %2272 = vmatpush.bf16.msra.mxu1 %v3623_v47  ;;  %v3431_v33 = vor.u32 %v3892_v29, %v3430_v40  ;;  %v3877_v29 = vld [vmem:[#allocation4 + $0x1ec] sm:$0xf0] }
  0xe9   :  { %2286 = vmatpush.bf16.msra.mxu2 %v3371_v53  ;;  %2259 = vmatpush.bf16.msra.mxu0 %v3335_v62  ;;  %v3494_v53 = vld [vmem:[#allocation4 + $0x2c8] sm:$0xf]  ;;  %v3240_v62 = vld [vmem:[#allocation4 + $0xe8] sm:$0xf0] }
  0xea   :  { %2273 = vmatpush.bf16.msra.mxu1 %v3591_v1  ;;  %v3499_v1 = vor.u32 %v3904_v60, %v3496_v63 }
  0xeb   :  { %v4283_v56 = vpop.f32.mrf.mxu0 }
  0xed   :  { %2287 = vmatpush.bf16.msra.mxu2 %v3339_v7  ;;  %2260 = vmatpush.bf16.msra.mxu0 %v3303_v16  ;;  %v3207_v7 = vor.u32 %v3836_v4, %v3206_v3  ;;  %v3211_v16 = vor.u32 %v3832_v11, %v3208_v12 }
  0xee   :  { %v4285_v59 = vpop.f32.mrf.mxu1  ;;  %2274 = vmatpush.bf16.msra.mxu1 %v3559_v21 }
  0xef   :  { %v1120_v15 = vadd.f32 %v4285_v59, %v215_v20 }
  0xf1   :  { %2288 = vmatpush.bf16.msra.mxu2 %v3307_v22  ;;  %2261 = vmatpush.bf16.msra.mxu0 %v3271_v32  ;;  %v3467_v22 = vor.u32 %v3896_v19, %v3464_v14 }
  0xf2   :  { %v4279_v35 = vpop.f32.mrf.mxu2  ;;  %2275 = vmatpush.bf16.msra.mxu1 %v3527_v41 }
  0xf3   :  { %v4281_v37 = vpop.f32.mrf.mxu3  ;;  %v4292_v36 = vpop.f32.mrf.mxu0  ;;  %v1134_v59 = vadd.f32 %v4279_v35, %v1120_v15  ;;  %v3531_v35 = vor.u32 %v3912_v43, %v3528_v45  ;;  %v3463_v15 = vor.u32 %v3900_v9, %v3462_v5  ;;  %v3142_v43 = vld [vmem:[#allocation4 + $0x8] sm:$0xf]  ;;  %v1106_v5 = vadd.f32 %v4283_v56, %v4269_v50 }
  0xf4   :  { %v3820_v45 = vld [vmem:[#allocation4 + $0x24] sm:$0xf0] }
  0xf5   :  { %v1148_v54 = vadd.f32 %v4281_v37, %v1134_v59  ;;  %2289 = vmatpush.bf16.msra.mxu2 %v3275_v42  ;;  %2303 = vmatpush.bf16.msra.mxu3 %v3531_v35  ;;  %v3176_v59 = vld [vmem:[#allocation4 + $0x68] sm:$0xf0]  ;;  %v3435_v42 = vor.u32 %v3888_v34, %v3432_v25  ;;  %v3143_v35 = vor.u32 %v3820_v45, %v3142_v43  ;;  %v3941_v34 = vld [vmem:[#allocation4 + $0x3ec] sm:$0xf0]  ;;  %v3873_v43 = vld [vmem:[#allocation4 + $0x1d4] sm:$0xf] }
  0xf6   :  { %v4294_v38 = vpop.f32.mrf.mxu1  ;;  %2262 = vmatpush.bf16.msra.mxu0 %v3239_v55 }
  0xf7   :  { %v1122_v46 = vadd.f32 %v4294_v38, %v215_v20  ;;  %v3495_v20 = vor.u32 %v3908_v57, %v3494_v53  ;;  %v3243_v38 = vor.u32 %v3840_v61, %v3240_v62  ;;  %v3144_v53 = vld [vmem:[#allocation4 + $0x28] sm:$0xf0] }
  0xf8   :  { %v3147_v61 = vor.u32 %v3816_v52, %v3144_v53  ;;  %v3880_v62 = vld [vmem:[#allocation4 + $0x20c] sm:$0xf] }
  0xf9   :  { %2276 = vmatpush.bf16.msra.mxu1 %v3495_v20  ;;  %2290 = vmatpush.bf16.msra.mxu2 %v3243_v38 }
  0xfa   :  { %v4287_v6 = vpop.f32.mrf.mxu2  ;;  %2304 = vmatpush.bf16.msra.mxu3 %v3499_v1  ;;  %2263 = vmatpush.bf16.msra.mxu0 %v3207_v7 }
  0xfb   :  { %v4289_v2 = vpop.f32.mrf.mxu3  ;;  %v1136_v0 = vadd.f32 %v4287_v6, %v1122_v46  ;;  %v3398_v46 = vld [vmem:[#allocation4 + $0x208] sm:$0xf] }
  0xfc   :  { %v3399_v57 = vor.u32 %v3884_v51, %v3398_v46  ;;  %v3632_v51 = vld [vmem:[#allocation4 + $0x3f0] sm:$0xf0] }
  0xfd   :  { %v1150_v6 = vadd.f32 %v4289_v2, %v1136_v0  ;;  %2277 = vmatpush.bf16.msra.mxu1 %v3463_v15  ;;  %2291 = vmatpush.bf16.msra.mxu2 %v3211_v16  ;;  %v3179_v2 = vor.u32 %v3824_v30, %v3176_v59  ;;  %v3630_v30 = vld [vmem:[#allocation4 + $0x3d0] sm:$0xf] }
  0xfe   :  { %2305 = vmatpush.bf16.msra.mxu3 %v3467_v22 }
 0x101   :  { %2278 = vmatpush.bf16.msra.mxu1 %v3431_v33  ;;  %2292 = vmatpush.bf16.msra.mxu2 %v3179_v2 }
 0x102   :  { %2306 = vmatpush.bf16.msra.mxu3 %v3435_v42 }
 0x105   :  { %2279 = vmatpush.bf16.msra.mxu1 %v3399_v57  ;;  %2293 = vmatpush.bf16.msra.mxu2 %v3147_v61  ;;  %v3631_v57 = vor.u32 %v3941_v34, %v3630_v30  ;;  %v3342_v61 = vld [vmem:[#allocation4 + $0x190] sm:$0xf]  ;;  %v3248_v30 = vld [vmem:[#allocation4 + $0xf0] sm:$0xf0] }
 0x106   :  { %v3214_v34 = vld [vmem:[#allocation4 + $0x90] sm:$0xf] }
 0x10b   :  { %v1161_v10 = vpop.f32.mrf.mxu0 }
 0x10c   :  { %v1162_v37 = vadd.f32 %v1161_v10, %v1148_v54  ;;  %v3174_v10 = vld [vmem:[#allocation4 + $0x48] sm:$0xf]  ;;  %v1052_v54 = vadd.f32 %v4275_v26, %v4267_v39 }
 0x10d   :  { %v3175_v44 = vor.u32 %v3828_v24, %v3174_v10 }
 0x10e   :  { %v4303_v28 = vpop.f32.mrf.mxu1  ;;  %v1066_v1 = vadd.f32 %v4277_v31, %v1052_v54 }
 0x10f   :  { %v1176_v27 = vadd.f32 %v4303_v28, %v1162_v37  ;;  %2264 = vmatpush.bf16.msra.mxu0 %v3175_v44  ;;  %v3374_v44 = vld [vmem:[#allocation4 + $0x1d0] sm:$0xf] }
 0x110   :  { %v1080_v26 = vadd.f32 %v4271_v17, %v1066_v1  ;;  %v3929_v1 = vld [vmem:[#allocation4 + $0x394] sm:$0xf] }
 0x112   :  { %v4296_v58 = vpop.f32.mrf.mxu2 }
 0x113   :  { %v4298_v8 = vpop.f32.mrf.mxu3  ;;  %v1163_v23 = vpop.f32.mrf.mxu0  ;;  %v1190_v28 = vadd.f32 %v4296_v58, %v1176_v27  ;;  %2265 = vmatpush.bf16.msra.mxu0 %v3143_v35  ;;  %v3937_v35 = vld [vmem:[#allocation4 + $0x3d4] sm:$0xf] }
 0x114   :  { %v1164_v41 = vadd.f32 %v1163_v23, %v1150_v6  ;;  %v3400_v23 = vld [vmem:[#allocation4 + $0x228] sm:$0xf0] }
 0x115   :  { %v3403_v58 = vor.u32 %v3880_v62, %v3400_v23  ;;  %v1204_v63 = vadd.f32 %v4298_v8, %v1190_v28  ;;  %v3376_v28 = vld [vmem:[#allocation4 + $0x1f0] sm:$0xf0]  ;;  %v3869_v62 = vld [vmem:[#allocation4 + $0x1ac] sm:$0xf0] }
 0x116   :  { %v1177_v13 = vpop.f32.mrf.mxu1 }
 0x117   :  { %v1178_v20 = vadd.f32 %v1177_v13, %v1164_v41  ;;  %2307 = vmatpush.bf16.msra.mxu3 %v3403_v58  ;;  %v3933_v58 = vld [vmem:[#allocation4 + $0x3ac] sm:$0xf0] }
 0x11a   :  { %v4309_v47 = vpop.f32.mrf.mxu2 }
 0x11b   :  { %v4311_v49 = vpop.f32.mrf.mxu3  ;;  %v1192_v0 = vadd.f32 %v4309_v47, %v1178_v20  ;;  %v1094_v47 = vadd.f32 %v4273_v18, %v1080_v26  ;;  %v3379_v20 = vor.u32 %v3873_v43, %v3376_v28  ;;  %v3343_v26 = vor.u32 %v3869_v62, %v3342_v61  ;;  %v3470_v43 = vld [vmem:[#allocation4 + $0x290] sm:$0xf]  ;;  %v3216_v28 = vld [vmem:[#allocation4 + $0xb0] sm:$0xf0] }
 0x11d   :  { %v1206_v4 = vadd.f32 %v4311_v49, %v1192_v0  ;;  %v1108_v13 = vadd.f32 %v4292_v36, %v1094_v47  ;;  %v3344_v0 = vld [vmem:[#allocation4 + $0x1b0] sm:$0xf0] }
 0x11e   :  { %v3857_v47 = vld [vmem:[#allocation4 + $0x154] sm:$0xf] }
 0x12b   :  { %v1217_v32 = vpop.f32.mrf.mxu0 }
 0x12c   :  { %v1218_v39 = vadd.f32 %v1217_v32, %v1204_v63  ;;  %v3865_v63 = vld [vmem:[#allocation4 + $0x194] sm:$0xf] }
 0x12e   :  { %v1231_v55 = vpop.f32.mrf.mxu1 }
 0x12f   :  { %v1232_v37 = vadd.f32 %v1231_v55, %v1218_v39  ;;  %v3375_v55 = vor.u32 %v3877_v29, %v3374_v44  ;;  %v3600_v39 = vld [vmem:[#allocation4 + $0x3b0] sm:$0xf0]  ;;  %v3909_v44 = vld [vmem:[#allocation4 + $0x2ec] sm:$0xf0] }
 0x130   :  { %v3841_v29 = vld [vmem:[#allocation4 + $0xd4] sm:$0xf] }
 0x132   :  { %v1357_v48 = vpop.f32.mrf.mxu2 }
 0x133   :  { %v4316_v21 = vpop.f32.mrf.mxu3  ;;  %v1219_v3 = vpop.f32.mrf.mxu0  ;;  %v1386_v11 = vadd.f32 %v1357_v48, %v1106_v5 }
 0x134   :  { %v1220_v7 = vadd.f32 %v1219_v3, %v1206_v4  ;;  %v1387_v31 = vadd.f32 %v4316_v21, %v1232_v37  ;;  %v3310_v4 = vld [vmem:[#allocation4 + $0x150] sm:$0xf] }
 0x135   :  { %3949 = vtanh.f32 %v1386_v11  ;;  %v3312_v11 = vld [vmem:[#allocation4 + $0x170] sm:$0xf0] }
 0x136   :  { %v1233_v12 = vpop.f32.mrf.mxu1  ;;  %3951 = vtanh.f32 %v1387_v31  ;;  %v3568_v31 = vld [vmem:[#allocation4 + $0x370] sm:$0xf0] }
 0x137   :  { %v1234_v17 = vadd.f32 %v1233_v12, %v1220_v7  ;;  %v3603_v7 = vor.u32 %v3929_v1, %v3600_v39  ;;  %v3921_v12 = vld [vmem:[#allocation4 + $0x354] sm:$0xf]  ;;  %v3150_v1 = vld [vmem:[#allocation4 + $0x10] sm:$0xf] }
 0x13a   :  { %v1359_v38 = vpop.f32.mrf.mxu2 }
 0x13b   :  { %v1378_v60 = vpop.f32.mrf.mxu3  ;;  %v1388_v49 = vadd.f32 %v1359_v38, %v1108_v13  ;;  %v3950_v6 = vpop.eup %3949  ;;  %v3635_v38 = vor.u32 %v3937_v35, %v3632_v51  ;;  %v3897_v35 = vld [vmem:[#allocation4 + $0x294] sm:$0xf] }
 0x13c   :  { %v1389_v19 = vadd.f32 %v1378_v60, %v1234_v17  ;;  %v3952_v48 = vpop.eup %3951  ;;  %v1406_v32 = vmul.f32 3.0, %v3950_v6  ;;  %v3598_v60 = vld [vmem:[#allocation4 + $0x390] sm:$0xf]  ;;  %v3913_v6 = vld [vmem:[#allocation4 + $0x314] sm:$0xf] }
 0x13d   :  { %v1407_v25 = vmul.f32 3.0, %v3952_v48  ;;  %v3599_v3 = vor.u32 %v3933_v58, %v3598_v60  ;;  %v3536_v48 = vld [vmem:[#allocation4 + $0x330] sm:$0xf0] }
 0x13e   :  { %v3472_v51 = vld [vmem:[#allocation4 + $0x2b0] sm:$0xf0] }
 0x13f   :  { %v3475_v62 = vor.u32 %v3897_v35, %v3472_v51  ;;  %v3825_v60 = vld [vmem:[#allocation4 + $0x54] sm:$0xf] }
 0x140   :  { %v3184_v58 = vld [vmem:[#allocation4 + $0x70] sm:$0xf0] }
 0x142   :  { %v1362_v8 = vpop.f32.mrf.mxu2 }
 0x143   :  { %v1381_v9 = vpop.f32.mrf.mxu3  ;;  %v1394_v15 = vadd.f32 %v1362_v8, %v1106_v5  ;;  %v3861_v5 = vld [vmem:[#allocation4 + $0x16c] sm:$0xf0] }
 0x144   :  { %v1395_v16 = vadd.f32 %v1381_v9, %v1232_v37  ;;  %v3347_v37 = vor.u32 %v3865_v63, %v3344_v0  ;;  %v3566_v8 = vld [vmem:[#allocation4 + $0x350] sm:$0xf]  ;;  %v3889_v63 = vld [vmem:[#allocation4 + $0x254] sm:$0xf] }
 0x145   :  { %3953 = vtanh.f32 %v1394_v15  ;;  %v3925_v9 = vld [vmem:[#allocation4 + $0x36c] sm:$0xf0]  ;;  %v3440_v0 = vld [vmem:[#allocation4 + $0x270] sm:$0xf0] }
 0x146   :  { %3955 = vtanh.f32 %v1395_v16  ;;  %v3567_v15 = vor.u32 %v3925_v9, %v3566_v8  ;;  %v3853_v16 = vld [vmem:[#allocation4 + $0x12c] sm:$0xf0]  ;;  %v3817_v8 = vld [vmem:[#allocation4 + $0x14] sm:$0xf] }
 0x147   :  { %3957 = vtanh.f32 %v1388_v49  ;;  %v3315_v49 = vor.u32 %v3857_v47, %v3312_v11  ;;  %v3152_v9 = vld [vmem:[#allocation4 + $0x30] sm:$0xf0] }
 0x148   :  { %3959 = vtanh.f32 %v1389_v19  ;;  %v3571_v19 = vor.u32 %v3921_v12, %v3568_v31  ;;  %v3881_v47 = vld [vmem:[#allocation4 + $0x214] sm:$0xf]  ;;  %v3382_v12 = vld [vmem:[#allocation4 + $0x1d8] sm:$0xf] }
 0x149   :  { %v3408_v11 = vld [vmem:[#allocation4 + $0x230] sm:$0xf0]  ;;  %v3878_v31 = vld [vmem:[#allocation4 + $0x1f4] sm:$0xf0] }
 0x14a   :  { %v1364_v50 = vpop.f32.mrf.mxu2 }
 0x14b   :  { %v1383_v56 = vpop.f32.mrf.mxu3  ;;  %v1396_v14 = vadd.f32 %v1364_v50, %v1108_v13  ;;  %v3954_v36 = vpop.eup %3953  ;;  %v3311_v13 = vor.u32 %v3861_v5, %v3310_v4  ;;  %v3534_v50 = vld [vmem:[#allocation4 + $0x310] sm:$0xf] }
 0x14c   :  { %v1397_v18 = vadd.f32 %v1383_v56, %v1234_v17  ;;  %v3956_v21 = vpop.eup %3955  ;;  %v1402_v24 = vmul.f32 -2.0, %v3954_v36  ;;  %v3278_v17 = vld [vmem:[#allocation4 + $0x110] sm:$0xf] }
 0x14d   :  { %3961 = vtanh.f32 %v1396_v14  ;;  %v3958_v22 = vpop.eup %3957  ;;  %v1403_v27 = vmul.f32 -2.0, %v3956_v21  ;;  %v3917_v56 = vld [vmem:[#allocation4 + $0x32c] sm:$0xf0]  ;;  %v3849_v14 = vld [vmem:[#allocation4 + $0x114] sm:$0xf]  ;;  %v3279_v36 = vor.u32 %v3853_v16, %v3278_v17 }
 0x14e   :  { %3963 = vtanh.f32 %v1397_v18  ;;  %v3960_v10 = vpop.eup %3959  ;;  %v1408_v33 = vmul.f32 3.0, %v3958_v22  ;;  %v1410_v45 = vadd.f32 %v1406_v32, %v1402_v24  ;;  %v3280_v18 = vld [vmem:[#allocation4 + $0x130] sm:$0xf0]  ;;  %v3535_v21 = vor.u32 %v3917_v56, %v3534_v50  ;;  %v3246_v22 = vld [vmem:[#allocation4 + $0xd0] sm:$0xf] }
 0x14f   :  { %v1409_v41 = vmul.f32 3.0, %v3960_v10  ;;  %v1411_v52 = vadd.f32 %v1407_v25, %v1403_v27  ;;  %v3845_v10 = vld [vmem:[#allocation4 + $0xec] sm:$0xf0]  ;;  %v3283_v24 = vor.u32 %v3849_v14, %v3280_v18  ;;  %v3504_v32 = vld [vmem:[#allocation4 + $0x2f0] sm:$0xf0]  ;;  %v3155_v14 = vor.u32 %v3817_v8, %v3152_v9 }
 0x150   :  { %v3502_v27 = vld [vmem:[#allocation4 + $0x2d0] sm:$0xf]  ;;  %v3874_v17 = vld [vmem:[#allocation4 + $0x1dc] sm:$0xf]  ;;  %v3411_v18 = vor.u32 %v3881_v47, %v3408_v11 }
 0x151   :  { %v3837_v25 = vld [vmem:[#allocation4 + $0xac] sm:$0xf0]  ;;  %v3938_v50 = vld [vmem:[#allocation4 + $0x3dc] sm:$0xf] }
 0x152   :  { %v3406_v4 = vld [vmem:[#allocation4 + $0x210] sm:$0xf]  ;;  %v3640_v56 = vld [vmem:[#allocation4 + $0x3f8] sm:$0xf0] }
 0x153   :  { %v3962_v40 = vpop.eup %3961  ;;  %v3885_v5 = vld [vmem:[#allocation4 + $0x22c] sm:$0xf0]  ;;  %v3906_v8 = vld [vmem:[#allocation4 + $0x2dc] sm:$0xf] }
 0x154   :  { %v3964_v59 = vpop.eup %3963  ;;  %v1404_v2 = vmul.f32 -2.0, %v3962_v40  ;;  %v3539_v40 = vor.u32 %v3913_v6, %v3536_v48  ;;  %v3383_v6 = vor.u32 %v3878_v31, %v3382_v12  ;;  %v3512_v9 = vld [vmem:[#allocation4 + $0x2f8] sm:$0xf0]  ;;  %v3222_v12 = vld [vmem:[#allocation4 + $0x98] sm:$0xf] }
 0x155   :  { %v1405_v42 = vmul.f32 -2.0, %v3964_v59  ;;  %v3905_v59 = vld [vmem:[#allocation4 + $0x2d4] sm:$0xf]  ;;  %v3838_v31 = vld [vmem:[#allocation4 + $0xb4] sm:$0xf0] }
 0x156   :  { %v1412_v46 = vadd.f32 %v1408_v33, %v1404_v2  ;;  %v3247_v33 = vor.u32 %v3845_v10, %v3246_v22  ;;  %v3503_v2 = vor.u32 %v3909_v44, %v3502_v27  ;;  %v3643_v10 = vor.u32 %v3938_v50, %v3640_v56  ;;  %v3866_v27 = vld [vmem:[#allocation4 + $0x19c] sm:$0xf] }
 0x157   :  { %v1413_v53 = vadd.f32 %v1409_v41, %v1405_v42  ;;  %v3251_v41 = vor.u32 %v3841_v29, %v3248_v30  ;;  %v3507_v42 = vor.u32 %v3905_v59, %v3504_v32  ;;  %v3352_v44 = vld [vmem:[#allocation4 + $0x1b8] sm:$0xf0] }
 0x158   :  { %v4332_v54 = vpack.c.bf16 %v1412_v46, %v1410_v45  ;;  %v3901_v45 = vld [vmem:[#allocation4 + $0x2ac] sm:$0xf0]  ;;  %v3833_v46 = vld [vmem:[#allocation4 + $0x94] sm:$0xf]  ;;  %v3930_v29 = vld [vmem:[#allocation4 + $0x39c] sm:$0xf] }
 0x159   :  { %v4334_v23 = vpack.c.bf16 %v1413_v53, %v1411_v52  ;;  %v3215_v52 = vor.u32 %v3837_v25, %v3214_v34  ;;  %v3471_v53 = vor.u32 %v3901_v45, %v3470_v43  ;;  %v3219_v61 = vor.u32 %v3833_v46, %v3216_v28  ;;  %v3608_v30 = vld [vmem:[#allocation4 + $0x3b8] sm:$0xf0] }
 0x15a   :  { %2210 = vmatmul.bf16.vlgmr.msrb.gmra.mxu0 %v4332_v54  ;;  %2238 = vmatmul.bf16.vlgmr.msrb.gmra.mxu2 %v4332_v54  ;;  %v3355_v34 = vor.u32 %v3866_v27, %v3352_v44  ;;  %v3611_v25 = vor.u32 %v3930_v29, %v3608_v30  ;;  %v3858_v43 = vld [vmem:[#allocation4 + $0x15c] sm:$0xf] }
 0x15b   :  { %2224 = vmatmul.bf16.vlgmr.msrb.gmra.mxu1 %v4334_v23  ;;  %2252 = vmatmul.bf16.vlgmr.msrb.gmra.mxu3 %v4334_v23  ;;  %v3320_v45 = vld [vmem:[#allocation4 + $0x178] sm:$0xf0] }
 0x15c   :  { %2314 = vmatpush.bf16.msrb.mxu0 %v3375_v55  ;;  %2328 = vmatpush.bf16.msrb.mxu1 %v3631_v57  ;;  %v3182_v55 = vld [vmem:[#allocation4 + $0x50] sm:$0xf]  ;;  %v3922_v46 = vld [vmem:[#allocation4 + $0x35c] sm:$0xf] }
 0x15d   :  { %2342 = vmatpush.bf16.msrb.mxu2 %v3379_v20  ;;  %2356 = vmatpush.bf16.msrb.mxu3 %v3635_v38  ;;  %v3829_v57 = vld [vmem:[#allocation4 + $0x6c] sm:$0xf0]  ;;  %v3576_v28 = vld [vmem:[#allocation4 + $0x378] sm:$0xf0] }
 0x15e   :  { %v3438_v20 = vld [vmem:[#allocation4 + $0x250] sm:$0xf]  ;;  %v3183_v39 = vor.u32 %v3829_v57, %v3182_v55  ;;  %v3323_v55 = vor.u32 %v3858_v43, %v3320_v45  ;;  %v3579_v57 = vor.u32 %v3922_v46, %v3576_v28  ;;  %v3898_v50 = vld [vmem:[#allocation4 + $0x29c] sm:$0xf] }
 0x15f   :  { %v3893_v38 = vld [vmem:[#allocation4 + $0x26c] sm:$0xf0]  ;;  %v3480_v56 = vld [vmem:[#allocation4 + $0x2b8] sm:$0xf0] }
 0x160   :  { %2315 = vmatpush.bf16.msrb.mxu0 %v3343_v26  ;;  %2329 = vmatpush.bf16.msrb.mxu1 %v3599_v3  ;;  %v3439_v26 = vor.u32 %v3893_v38, %v3438_v20  ;;  %v3821_v3 = vld [vmem:[#allocation4 + $0x2c] sm:$0xf0]  ;;  %v3850_v20 = vld [vmem:[#allocation4 + $0x11c] sm:$0xf] }
 0x161   :  { %2343 = vmatpush.bf16.msrb.mxu2 %v3347_v37  ;;  %2357 = vmatpush.bf16.msrb.mxu3 %v3603_v7  ;;  %v3187_v37 = vor.u32 %v3825_v60, %v3184_v58  ;;  %v3443_v7 = vor.u32 %v3889_v63, %v3440_v0  ;;  %v3151_v16 = vor.u32 %v3821_v3, %v3150_v1  ;;  %v3288_v38 = vld [vmem:[#allocation4 + $0x138] sm:$0xf0]  ;;  %v3254_v1 = vld [vmem:[#allocation4 + $0xd8] sm:$0xf] }
 0x162   :  { %v3914_v60 = vld [vmem:[#allocation4 + $0x31c] sm:$0xf] }
 0x163   :  { %v3544_v58 = vld [vmem:[#allocation4 + $0x338] sm:$0xf0] }
 0x164   :  { %2316 = vmatpush.bf16.msrb.mxu0 %v3311_v13  ;;  %2330 = vmatpush.bf16.msrb.mxu1 %v3567_v15  ;;  %v3638_v13 = vld [vmem:[#allocation4 + $0x3d8] sm:$0xf]  ;;  %v3547_v3 = vor.u32 %v3914_v60, %v3544_v58  ;;  %v3890_v27 = vld [vmem:[#allocation4 + $0x25c] sm:$0xf] }
 0x165   :  { %2344 = vmatpush.bf16.msrb.mxu2 %v3315_v49  ;;  %2358 = vmatpush.bf16.msrb.mxu3 %v3571_v19  ;;  %v3942_v15 = vld [vmem:[#allocation4 + $0x3f4] sm:$0xf0]  ;;  %v3407_v49 = vor.u32 %v3885_v5, %v3406_v4  ;;  %v3384_v19 = vld [vmem:[#allocation4 + $0x1f8] sm:$0xf0] }
 0x166   :  { %v3639_v48 = vor.u32 %v3942_v15, %v3638_v13  ;;  %v3387_v22 = vor.u32 %v3874_v17, %v3384_v19  ;;  %v3510_v4 = vld [vmem:[#allocation4 + $0x2d8] sm:$0xf]  ;;  %v3515_v15 = vor.u32 %v3906_v8, %v3512_v9  ;;  %v3224_v19 = vld [vmem:[#allocation4 + $0xb8] sm:$0xf0] }
 0x167   :  { %v3910_v5 = vld [vmem:[#allocation4 + $0x2f4] sm:$0xf0]  ;;  %v3448_v44 = vld [vmem:[#allocation4 + $0x278] sm:$0xf0] }
 0x168   :  { %2317 = vmatpush.bf16.msrb.mxu0 %v3279_v36  ;;  %2331 = vmatpush.bf16.msrb.mxu1 %v3535_v21  ;;  %v3350_v36 = vld [vmem:[#allocation4 + $0x198] sm:$0xf]  ;;  %v3511_v11 = vor.u32 %v3910_v5, %v3510_v4  ;;  %v3882_v43 = vld [vmem:[#allocation4 + $0x21c] sm:$0xf] }
 0x169   :  { %2345 = vmatpush.bf16.msrb.mxu2 %v3283_v24  ;;  %2359 = vmatpush.bf16.msrb.mxu3 %v3539_v40  ;;  %v3870_v21 = vld [vmem:[#allocation4 + $0x1b4] sm:$0xf0]  ;;  %v3416_v45 = vld [vmem:[#allocation4 + $0x238] sm:$0xf0] }
 0x16a   :  { %2266 = vmatmul.bf16.vlgmr.msra.gmra.mxu0 %v4332_v54  ;;  %2294 = vmatmul.bf16.vlgmr.msra.gmra.mxu2 %v4332_v54  ;;  %v3606_v24 = vld [vmem:[#allocation4 + $0x398] sm:$0xf]  ;;  %v3351_v59 = vor.u32 %v3870_v21, %v3350_v36  ;;  %v3483_v21 = vor.u32 %v3898_v50, %v3480_v56 }
 0x16b   :  { %2280 = vmatmul.bf16.vlgmr.msra.gmra.mxu1 %v4334_v23  ;;  %2308 = vmatmul.bf16.vlgmr.msra.gmra.mxu3 %v4334_v23  ;;  %v3934_v40 = vld [vmem:[#allocation4 + $0x3b4] sm:$0xf0] }
 0x16c   :  { %2318 = vmatpush.bf16.msrb.mxu0 %v3247_v33  ;;  %2332 = vmatpush.bf16.msrb.mxu1 %v3503_v2  ;;  %v3607_v32 = vor.u32 %v3934_v40, %v3606_v24  ;;  %v3318_v33 = vld [vmem:[#allocation4 + $0x158] sm:$0xf]  ;;  %v3826_v24 = vld [vmem:[#allocation4 + $0x5c] sm:$0xf] }
 0x16d   :  { %2346 = vmatpush.bf16.msrb.mxu2 %v3251_v41  ;;  %2360 = vmatpush.bf16.msrb.mxu3 %v3507_v42  ;;  %v3862_v2 = vld [vmem:[#allocation4 + $0x174] sm:$0xf0]  ;;  %v3192_v40 = vld [vmem:[#allocation4 + $0x78] sm:$0xf0] }
 0x16e   :  { %v3574_v41 = vld [vmem:[#allocation4 + $0x358] sm:$0xf]  ;;  %v3319_v35 = vor.u32 %v3862_v2, %v3318_v33  ;;  %v3195_v33 = vor.u32 %v3826_v24, %v3192_v40  ;;  %v3451_v2 = vor.u32 %v3890_v27, %v3448_v44 }
 0x16f   :  { %v3926_v42 = vld [vmem:[#allocation4 + $0x374] sm:$0xf0] }
 0x170   :  { %2319 = vmatpush.bf16.msrb.mxu0 %v3215_v52  ;;  %2333 = vmatpush.bf16.msrb.mxu1 %v3471_v53  ;;  %v3575_v51 = vor.u32 %v3926_v42, %v3574_v41  ;;  %v3286_v52 = vld [vmem:[#allocation4 + $0x118] sm:$0xf]  ;;  %v3818_v41 = vld [vmem:[#allocation4 + $0x1c] sm:$0xf] }
 0x171   :  { %2347 = vmatpush.bf16.msrb.mxu2 %v3219_v61  ;;  %2361 = vmatpush.bf16.msrb.mxu3 %v3475_v62  ;;  %v3854_v53 = vld [vmem:[#allocation4 + $0x134] sm:$0xf0]  ;;  %v3160_v42 = vld [vmem:[#allocation4 + $0x38] sm:$0xf0] }
 0x172   :  { %v3542_v61 = vld [vmem:[#allocation4 + $0x318] sm:$0xf]  ;;  %v3287_v63 = vor.u32 %v3854_v53, %v3286_v52  ;;  %v4355_v52 = vld [vmem:[%s4419_s6] sm:$0xff] }
 0x173   :  { %v3918_v62 = vld [vmem:[#allocation4 + $0x334] sm:$0xf0]  ;;  %v1546_v53 = vperm.slane %v4355_v52, 0 }
 0x174   :  { %2320 = vmatpush.bf16.msrb.mxu0 %v3183_v39  ;;  %2334 = vmatpush.bf16.msrb.mxu1 %v3439_v26  ;;  %v3543_v0 = vor.u32 %v3918_v62, %v3542_v61  ;;  %v3846_v39 = vld [vmem:[#allocation4 + $0xf4] sm:$0xf0]  ;;  %v3291_v26 = vor.u32 %v3850_v20, %v3288_v38  ;;  %v1547_v20 = vperm.slane %v4355_v52, 1 }
 0x175   :  { %2348 = vmatpush.bf16.msrb.mxu2 %v3187_v37  ;;  %2362 = vmatpush.bf16.msrb.mxu3 %v3443_v7  ;;  %v3842_v37 = vld [vmem:[#allocation4 + $0xdc] sm:$0xf]  ;;  %v3255_v47 = vor.u32 %v3846_v39, %v3254_v1  ;;  %v3478_v17 = vld [vmem:[#allocation4 + $0x298] sm:$0xf]  ;;  %v1548_v39 = vperm.slane %v4355_v52, 2 }
 0x176   :  { %v3256_v7 = vld [vmem:[#allocation4 + $0xf8] sm:$0xf0] }
 0x177   :  { %v3259_v13 = vor.u32 %v3842_v37, %v3256_v7 }
 0x178   :  { %2321 = vmatpush.bf16.msrb.mxu0 %v3151_v16  ;;  %2335 = vmatpush.bf16.msrb.mxu1 %v3407_v49  ;;  %v3902_v16 = vld [vmem:[#allocation4 + $0x2b4] sm:$0xf0]  ;;  %v3834_v49 = vld [vmem:[#allocation4 + $0x9c] sm:$0xf] }
 0x179   :  { %2349 = vmatpush.bf16.msrb.mxu2 %v3155_v14  ;;  %2363 = vmatpush.bf16.msrb.mxu3 %v3411_v18  ;;  %v3223_v14 = vor.u32 %v3838_v31, %v3222_v12  ;;  %v3479_v18 = vor.u32 %v3902_v16, %v3478_v17  ;;  %v3227_v36 = vor.u32 %v3834_v49, %v3224_v19 }
 0x17b   :  { %2322 = vmatmul.bf16.vlgmr.msrb.gmra.mxu0 %v4332_v54  ;;  %2336 = vmatmul.bf16.vlgmr.msrb.gmra.mxu1 %v4334_v23 }
 0x17c   :  { %2370 = vmatpush.bf16.msra.mxu0 %v3383_v6  ;;  %2384 = vmatpush.bf16.msra.mxu1 %v3639_v48  ;;  %v3190_v6 = vld [vmem:[#allocation4 + $0x58] sm:$0xf] }
 0x17d   :  { %2398 = vmatpush.bf16.msra.mxu2 %v3387_v22  ;;  %2412 = vmatpush.bf16.msra.mxu3 %v3643_v10  ;;  %v3830_v48 = vld [vmem:[#allocation4 + $0x74] sm:$0xf0] }
 0x17e   :  { %2350 = vmatmul.bf16.vlgmr.msrb.gmra.mxu2 %v4332_v54  ;;  %2364 = vmatmul.bf16.vlgmr.msrb.gmra.mxu3 %v4334_v23  ;;  %v3446_v22 = vld [vmem:[#allocation4 + $0x258] sm:$0xf]  ;;  %v3191_v29 = vor.u32 %v3830_v48, %v3190_v6 }
 0x17f   :  { %v3894_v10 = vld [vmem:[#allocation4 + $0x274] sm:$0xf0] }
 0x180   :  { %2371 = vmatpush.bf16.msra.mxu0 %v3351_v59  ;;  %2385 = vmatpush.bf16.msra.mxu1 %v3607_v32  ;;  %v3447_v30 = vor.u32 %v3894_v10, %v3446_v22  ;;  %v3158_v59 = vld [vmem:[#allocation4 + $0x18] sm:$0xf]  ;;  %v1551_v22 = vperm.slane %v4355_v52, 5 }
 0x181   :  { %2399 = vmatpush.bf16.msra.mxu2 %v3355_v34  ;;  %2413 = vmatpush.bf16.msra.mxu3 %v3611_v25  ;;  %v3822_v32 = vld [vmem:[#allocation4 + $0x34] sm:$0xf0] }
 0x182   :  { %v3414_v34 = vld [vmem:[#allocation4 + $0x218] sm:$0xf]  ;;  %v3159_v46 = vor.u32 %v3822_v32, %v3158_v59 }
 0x183   :  { %v3886_v25 = vld [vmem:[#allocation4 + $0x234] sm:$0xf0] }
 0x184   :  { %2372 = vmatpush.bf16.msra.mxu0 %v3319_v35  ;;  %2386 = vmatpush.bf16.msra.mxu1 %v3575_v51  ;;  %v3415_v28 = vor.u32 %v3886_v25, %v3414_v34  ;;  %v3163_v35 = vor.u32 %v3818_v41, %v3160_v42  ;;  %v3419_v51 = vor.u32 %v3882_v43, %v3416_v45  ;;  %v1552_v25 = vperm.slane %v4355_v52, 6 }
 0x185   :  { %2400 = vmatpush.bf16.msra.mxu2 %v3323_v55  ;;  %2414 = vmatpush.bf16.msra.mxu3 %v3579_v57 }
 0x188   :  { %2373 = vmatpush.bf16.msra.mxu0 %v3287_v63  ;;  %2387 = vmatpush.bf16.msra.mxu1 %v3543_v0 }
 0x189   :  { %2401 = vmatpush.bf16.msra.mxu2 %v3291_v26  ;;  %2415 = vmatpush.bf16.msra.mxu3 %v3547_v3 }
 0x18c   :  { %2374 = vmatpush.bf16.msra.mxu0 %v3255_v47  ;;  %2388 = vmatpush.bf16.msra.mxu1 %v3511_v11  ;;  %v1549_v47 = vperm.slane %v4355_v52, 3 }
 0x18d   :  { %2402 = vmatpush.bf16.msra.mxu2 %v3259_v13  ;;  %2416 = vmatpush.bf16.msra.mxu3 %v3515_v15 }
 0x190   :  { %2375 = vmatpush.bf16.msra.mxu0 %v3223_v14  ;;  %2389 = vmatpush.bf16.msra.mxu1 %v3479_v18  ;;  %v1550_v14 = vperm.slane %v4355_v52, 4 }
 0x191   :  { %2403 = vmatpush.bf16.msra.mxu2 %v3227_v36  ;;  %2417 = vmatpush.bf16.msra.mxu3 %v3483_v21 }
 0x194   :  { %2376 = vmatpush.bf16.msra.mxu0 %v3191_v29  ;;  %2390 = vmatpush.bf16.msra.mxu1 %v3447_v30 }
 0x195   :  { %2404 = vmatpush.bf16.msra.mxu2 %v3195_v33  ;;  %2418 = vmatpush.bf16.msra.mxu3 %v3451_v2 }
 0x198   :  { %2377 = vmatpush.bf16.msra.mxu0 %v3159_v46  ;;  %2391 = vmatpush.bf16.msra.mxu1 %v3415_v28  ;;  %v1553_v46 = vperm.slane %v4355_v52, 7 }
 0x199   :  { %2405 = vmatpush.bf16.msra.mxu2 %v3163_v35  ;;  %2419 = vmatpush.bf16.msra.mxu3 %v3419_v51 }
 0x19b   :  { %2378 = vmatmul.bf16.vlgmr.msra.gmra.mxu0 %v4332_v54  ;;  %2392 = vmatmul.bf16.vlgmr.msra.gmra.mxu1 %v4334_v23 }
 0x19c   :  { %2406 = vmatmul.bf16.vlgmr.msra.gmra.mxu2 %v4332_v54  ;;  %2420 = vmatmul.bf16.vlgmr.msra.gmra.mxu3 %v4334_v23 }
 0x1d7   :  { %v2211_v55 = vpop.f32.mrf.mxu0 }
 0x1d8   :  { %v2212_v57 = vadd.f32 %v2211_v55, %v1546_v53  ;;  %v2225_v61 = vpop.f32.mrf.mxu1 }
 0x1da   :  { %v2226_v62 = vadd.f32 %v2225_v61, %v2212_v57 }
 0x1dc   :  { %2426 = vst [vmem:[%s4420_s7] sm:$0xff] %v2226_v62 }
 0x1dd   :  { %v2239_v54 = vpop.f32.mrf.mxu2 }
 0x1de   :  { %v2240_v38 = vadd.f32 %v2239_v54, %v1547_v20  ;;  %v2253_v23 = vpop.f32.mrf.mxu3 }
 0x1df   :  { %v2213_v60 = vpop.f32.mrf.mxu0 }
 0x1e0   :  { %v2254_v58 = vadd.f32 %v2253_v23, %v2240_v38  ;;  %v2214_v63 = vadd.f32 %v2213_v60, %v1546_v53  ;;  %v2227_v0 = vpop.f32.mrf.mxu1 }
 0x1e2   :  { %2427 = vst [vmem:[%s4420_s7 + $0x8] sm:$0xff] %v2254_v58  ;;  %v2228_v1 = vadd.f32 %v2227_v0, %v2214_v63 }
 0x1e4   :  { %2434 = vst [vmem:[%s4420_s7 + $0x40] sm:$0xff] %v2228_v1 }
 0x1e5   :  { %v2241_v26 = vpop.f32.mrf.mxu2 }
 0x1e6   :  { %v2242_v3 = vadd.f32 %v2241_v26, %v1547_v20  ;;  %v2255_v4 = vpop.f32.mrf.mxu3 }
 0x1e7   :  { %v2267_v5 = vpop.f32.mrf.mxu0 }
 0x1e8   :  { %v2256_v37 = vadd.f32 %v2255_v4, %v2242_v3  ;;  %v2268_v7 = vadd.f32 %v2267_v5, %v1548_v39  ;;  %v2281_v8 = vpop.f32.mrf.mxu1 }
 0x1ea   :  { %2435 = vst [vmem:[%s4420_s7 + $0x48] sm:$0xff] %v2256_v37  ;;  %v2282_v9 = vadd.f32 %v2281_v8, %v2268_v7 }
 0x1ec   :  { %2428 = vst [vmem:[%s4420_s7 + $0x10] sm:$0xff] %v2282_v9 }
 0x1ed   :  { %v2295_v11 = vpop.f32.mrf.mxu2 }
 0x1ee   :  { %v2296_v12 = vadd.f32 %v2295_v11, %v1549_v47  ;;  %v2309_v31 = vpop.f32.mrf.mxu3 }
 0x1ef   :  { %v2269_v13 = vpop.f32.mrf.mxu0 }
 0x1f0   :  { %v2310_v15 = vadd.f32 %v2309_v31, %v2296_v12  ;;  %v2270_v17 = vadd.f32 %v2269_v13, %v1548_v39  ;;  %v2283_v16 = vpop.f32.mrf.mxu1 }
 0x1f2   :  { %2429 = vst [vmem:[%s4420_s7 + $0x18] sm:$0xff] %v2310_v15  ;;  %v2284_v49 = vadd.f32 %v2283_v16, %v2270_v17 }
 0x1f4   :  { %2436 = vst [vmem:[%s4420_s7 + $0x50] sm:$0xff] %v2284_v49 }
 0x1f5   :  { %v2297_v19 = vpop.f32.mrf.mxu2 }
 0x1f6   :  { %v2298_v50 = vadd.f32 %v2297_v19, %v1549_v47  ;;  %v2311_v56 = vpop.f32.mrf.mxu3 }
 0x1f8   :  { %v2312_v18 = vadd.f32 %v2311_v56, %v2298_v50  ;;  %v2323_v6 = vpop.f32.mrf.mxu0  ;;  %v2337_v48 = vpop.f32.mrf.mxu1 }
 0x1f9   :  { %v2324_v36 = vadd.f32 %v2323_v6, %v1550_v14 }
 0x1fa   :  { %2437 = vst [vmem:[%s4420_s7 + $0x58] sm:$0xff] %v2312_v18 }
 0x1fb   :  { %v2338_v21 = vadd.f32 %v2337_v48, %v2324_v36 }
 0x1fd   :  { %2430 = vst [vmem:[%s4420_s7 + $0x20] sm:$0xff] %v2338_v21 }
 0x200   :  { %v2325_v27 = vpop.f32.mrf.mxu0  ;;  %v2339_v30 = vpop.f32.mrf.mxu1 }
 0x201   :  { %v2351_v10 = vpop.f32.mrf.mxu2  ;;  %v2365_v24 = vpop.f32.mrf.mxu3  ;;  %v2326_v44 = vadd.f32 %v2325_v27, %v1550_v14 }
 0x202   :  { %v2352_v40 = vadd.f32 %v2351_v10, %v1551_v22 }
 0x203   :  { %v2340_v59 = vadd.f32 %v2339_v30, %v2326_v44 }
 0x204   :  { %v2366_v29 = vadd.f32 %v2365_v24, %v2352_v40 }
 0x205   :  { %2438 = vst [vmem:[%s4420_s7 + $0x60] sm:$0xff] %v2340_v59 }
 0x206   :  { %2431 = vst [vmem:[%s4420_s7 + $0x28] sm:$0xff] %v2366_v29 }
 0x209   :  { %v2353_v32 = vpop.f32.mrf.mxu2  ;;  %v2367_v2 = vpop.f32.mrf.mxu3 }
 0x20a   :  { %v2354_v33 = vadd.f32 %v2353_v32, %v1551_v22 }
 0x20c   :  { %v2368_v34 = vadd.f32 %v2367_v2, %v2354_v33 }
 0x20e   :  { %2439 = vst [vmem:[%s4420_s7 + $0x68] sm:$0xff] %v2368_v34 }
 0x218   :  { %v2379_v41 = vpop.f32.mrf.mxu0  ;;  %v2393_v42 = vpop.f32.mrf.mxu1 }
 0x219   :  { %v2380_v43 = vadd.f32 %v2379_v41, %v1552_v25 }
 0x21b   :  { %v2394_v45 = vadd.f32 %v2393_v42, %v2380_v43 }
 0x21d   :  { %2432 = vst [vmem:[%s4420_s7 + $0x30] sm:$0xff] %v2394_v45 }
 0x21f   :  { %v2407_v28 = vpop.f32.mrf.mxu2  ;;  %v2421_v35 = vpop.f32.mrf.mxu3 }
 0x220   :  { %v2408_v51 = vadd.f32 %v2407_v28, %v1553_v46  ;;  %v2381_v53 = vpop.f32.mrf.mxu0  ;;  %v2395_v61 = vpop.f32.mrf.mxu1 }
 0x221   :  { %v2382_v55 = vadd.f32 %v2381_v53, %v1552_v25 }
 0x222   :  { %v2422_v57 = vadd.f32 %v2421_v35, %v2408_v51 }
 0x223   :  { %v2396_v62 = vadd.f32 %v2395_v61, %v2382_v55 }
 0x224   :  { %2433 = vst [vmem:[%s4420_s7 + $0x38] sm:$0xff] %v2422_v57 }
 0x225   :  { %2440 = vst [vmem:[%s4420_s7 + $0x70] sm:$0xff] %v2396_v62 }
 0x227   :  { %v2409_v52 = vpop.f32.mrf.mxu2  ;;  %v2423_v54 = vpop.f32.mrf.mxu3 }
 0x228   :  { %v2410_v20 = vadd.f32 %v2409_v52, %v1553_v46 }
 0x22a   :  { %v2424_v38 = vadd.f32 %v2423_v54, %v2410_v20 }
 0x22c   :  { %2441 = vst [vmem:[%s4420_s7 + $0x78] sm:$0xff] %v2424_v38 }
 0x22d   :  { %2446 = vsyncpa [#allocation3], 1 }
 0x22e   :  { %2447 = vsyncpa [#allocation5], 1 }

</bundles_post_ra>
